<compile_context>
chip_gen: v5e
topology: v5e:2x2
jax: 0.10.0
libtpu: 0.0.40
codegen_flags: <defaults>
</compile_context>

<pallas_src>
import functools

import jax
import jax.numpy as jnp
from jax.experimental import pallas as pl
from jax.experimental.pallas import tpu as pltpu

_MIB = 1024 * 1024


# ------------------------------ tiling helpers --------------------------------

def _round_up(x, m):
    return ((x + m - 1) // m) * m


def _vmem_budget_bytes():
    """Generation-aware scoped-VMEM budget (v5e/v6e phys 128 MiB, v7x 64 MiB)."""
    phys = 64 * _MIB  # conservative fallback = v7x per-TC VMEM
    try:
        info = pltpu.get_tpu_info()
        phys = int(getattr(info, "vmem_capacity_bytes", phys))
    except Exception:
        pass
    # leave headroom for compiler-internal scratch
    return max(32 * _MIB, min(int(phys * 0.75), 100 * _MIB))


def _divisible_tiles(dim, prefs):
    ts = [t for t in prefs if t <= dim and dim % t == 0]
    return ts if ts else [dim]


# ------------------------------ Pallas kernels --------------------------------

def _matmul_single_kernel(x_ref, w_ref, o_ref):
    """o = x @ w with the whole K dimension resident (common GCN case)."""
    o_ref[...] = jnp.dot(x_ref[...], w_ref[...],
                         preferred_element_type=jnp.float32).astype(o_ref.dtype)


def _matmul_multi_kernel(x_ref, w_ref, o_ref, acc_ref):
    """o = x @ w tiled over (rows, K) with an f32 VMEM accumulator."""
    @pl.when(pl.program_id(1) == 0)
    def _():
        acc_ref[...] = jnp.zeros_like(acc_ref)

    acc_ref[...] += jnp.dot(x_ref[...], w_ref[...],
                            preferred_element_type=jnp.float32)

    @pl.when(pl.program_id(1) == pl.num_programs(1) - 1)
    def _():
        o_ref[...] = acc_ref[...].astype(o_ref.dtype)


def _agg_prelu_kernel(a_ref, xw_ref, dr_ref, dc_ref, b_ref, alpha_ref,
                      z_ref, acc_ref, *, tk, resident):
    """z = PReLU( (D^-1/2 (A+I) D^-1/2) @ XW + b ), A tiled (rows x K)."""
    k = pl.program_id(1)

    @pl.when(k == 0)
    def _():
        acc_ref[...] = jnp.zeros_like(acc_ref)

    # Fused symmetric normalization of the A tile on the VPU (free filler
    # under the DMA/MXU-bound main loop).
    a_hat = (a_ref[...].astype(jnp.float32) * dr_ref[...] * dc_ref[...]
             ).astype(jnp.bfloat16)

    if resident:
        # XW is fully resident in VMEM; slice the current K chunk in place.
        off = pl.multiple_of(k * tk, tk)
        xw_tile = xw_ref[pl.ds(off, tk), :]
    else:
        xw_tile = xw_ref[...]

    acc_ref[...] += jnp.dot(a_hat, xw_tile, preferred_element_type=jnp.float32)

    @pl.when(k == pl.num_programs(1) - 1)
    def _():
        h = acc_ref[...] + b_ref[...]                 # broadcast (1, H) bias
        z_ref[...] = jnp.where(h > 0, h, alpha_ref[...] * h).astype(z_ref.dtype)


def _fused_layer_kernel(a_ref, z_ref, w_ref, dr_ref, dc_ref, b_ref, alpha_ref,
                        o_ref):
    """Small-graph path: one call does Z@W + A_hat@(ZW) + bias + PReLU.

    ZW is recomputed per row block (grid has <= 2 blocks so both v7x
    TensorCores stay busy); for graphs small enough to take this path the
    redundant flops are negligible vs per-grid-step overhead.
    """
    zw = jnp.dot(z_ref[...], w_ref[...],
                 preferred_element_type=jnp.float32).astype(jnp.bfloat16)
    a_hat = (a_ref[...].astype(jnp.float32) * dr_ref[...] * dc_ref[...]
             ).astype(jnp.bfloat16)
    h = jnp.dot(a_hat, zw, preferred_element_type=jnp.float32) + b_ref[...]
    o_ref[...] = jnp.where(h > 0, h, alpha_ref[...] * h).astype(o_ref.dtype)


# ------------------------------ wrappers ---------------------------------------

def matmul_bf16(x, w, *, out_dtype=jnp.bfloat16, vmem_budget=None):
    """(M, K) @ (K, N) on the MXU, bf16 inputs, f32 accumulation."""
    m, k = x.shape
    k2, n = w.shape
    assert k == k2
    budget = _vmem_budget_bytes() if vmem_budget is None else vmem_budget
    out_sz = jnp.dtype(out_dtype).itemsize
    if x.dtype != jnp.bfloat16:
        x = x.astype(jnp.bfloat16)
    if w.dtype != jnp.bfloat16:
        w = w.astype(jnp.bfloat16)

    tm_cands = _divisible_tiles(m, (1024, 512, 256, 128))
    two = [t for t in tm_cands if m // t >= 2]      # v7x: keep both TCs busy
    tm_cands = two if two else tm_cands

    cost = pl.CostEstimate(flops=2 * m * k * n, transcendentals=0,
                           bytes_accessed=2 * (m * k + k * n) + m * n * out_sz)

    def cparams(sem):
        return pltpu.CompilerParams(dimension_semantics=sem,
                                    vmem_limit_bytes=budget)

    # Common GCN case: K (= F or H) fits in VMEM -> single K step, no scratch
    # accumulator, no init/finalize epilogue, one grid axis.
    def single_fits(tm):
        return (2 * tm * k * 2 + 2 * k * n * 2
                + 2 * tm * n * out_sz + 2 * _MIB) <= budget

    tm_single = next((t for t in tm_cands if single_fits(t)), None)
    if tm_single is not None:
        tm = tm_single
        return pl.pallas_call(
            _matmul_single_kernel,
            out_shape=jax.ShapeDtypeStruct((m, n), out_dtype),
            grid_spec=pltpu.PrefetchScalarGridSpec(
                num_scalar_prefetch=0,
                grid=(m // tm,),
                in_specs=[pl.BlockSpec((tm, k), lambda i: (i, 0)),
                          pl.BlockSpec((k, n), lambda i: (0, 0))],
                out_specs=pl.BlockSpec((tm, n), lambda i: (i, 0)),
            ),
            compiler_params=cparams(("parallel",)),
            cost_estimate=cost,
        )(x, w)

    # Large-K fallback: tile the contraction axis with an f32 accumulator.
    # TODO(synk): pad K for huge feature dims that are not 128-divisible.
    tk_cands = _divisible_tiles(k, (512, 256, 128))
    tm, tk = tm_cands[-1], tk_cands[-1]
    return pl.pallas_call(
        _matmul_multi_kernel,
        out_shape=jax.ShapeDtypeStruct((m, n), out_dtype),
        grid_spec=pltpu.PrefetchScalarGridSpec(
            num_scalar_prefetch=0,
            grid=(m // tm, k // tk),
            in_specs=[pl.BlockSpec((tm, tk), lambda i, kk: (i, kk)),
                      pl.BlockSpec((tk, n), lambda i, kk: (kk, 0))],
            out_specs=pl.BlockSpec((tm, n), lambda i, kk: (i, 0)),
            scratch_shapes=[pltpu.VMEM((tm, n), jnp.float32)],
        ),
        compiler_params=cparams(("parallel", "arbitrary")),
        cost_estimate=cost,
    )(x, w)


def gcn_aggregate_prelu(a_plus_i, xw, d_inv_sqrt, b, alpha, *,
                        out_dtype=jnp.bfloat16, vmem_budget=None):
    """z = PReLU( sym_norm(A+I) @ XW + b ), normalization fused in-kernel."""
    n_pad = a_plus_i.shape[0]
    h = xw.shape[1]
    budget = _vmem_budget_bytes() if vmem_budget is None else vmem_budget
    out_sz = jnp.dtype(out_dtype).itemsize
    if xw.dtype != jnp.bfloat16:
        xw = xw.astype(jnp.bfloat16)

    tm_cands = _divisible_tiles(n_pad, (1024, 512, 256, 128))
    two = [t for t in tm_cands if n_pad // t >= 2]   # v7x: >=2 row blocks
    tm_cands = two if two else tm_cands
    tk_cands = _divisible_tiles(n_pad, (512, 256, 128))

    # Resident XW (double-buffer-safe bound); stream only for huge N*H.
    resident = (2 * n_pad * h * 2) <= 24 * _MIB

    def footprint(tm, tk, n_a_buf):
        a_b = n_a_buf * tm * tk * 2
        xw_b = (2 * n_pad * h * 2) if resident else (2 * tk * h * 2)
        acc = tm * h * 4
        out = 2 * tm * h * out_sz
        misc = 2 * (tm + tk + 4 * h) * 4 + 2 * _MIB
        return a_b + xw_b + acc + out + misc

    tm, tk = tm_cands[-1], tk_cands[-1]
    found = False
    for tmc in tm_cands:                              # prefer biggest tiles
        for tkc in tk_cands:
            if footprint(tmc, tkc, 2) <= budget:
                tm, tk, found = tmc, tkc, True
                break
        if found:
            break
    if not found:
        resident = False                              # stream XW, minimal tiles
        tm, tk = tm_cands[-1], tk_cands[-1]

    # Deeper A pipeline if VMEM headroom remains (hides per-step DMA latency).
    a_bufs = 3 if footprint(tm, tk, 3) <= budget else 2
    if a_bufs == 3:
        a_spec = pl.BlockSpec((tm, tk), lambda i, kk: (i, kk),
                              pipeline_mode=pl.Buffered(3))
    else:
        a_spec = pl.BlockSpec((tm, tk), lambda i, kk: (i, kk))

    if resident:
        xw_spec = pl.BlockSpec((n_pad, h), lambda i, kk: (0, 0))  # grid-invariant
    else:
        xw_spec = pl.BlockSpec((tk, h), lambda i, kk: (kk, 0))    # streamed slab

    grid = (n_pad // tm, n_pad // tk)
    kernel = functools.partial(_agg_prelu_kernel, tk=tk, resident=resident)

    cost = pl.CostEstimate(
        flops=2 * n_pad * n_pad * h,
        transcendentals=0,
        bytes_accessed=n_pad * n_pad * 2
        + (1 if resident else grid[0]) * n_pad * h * 2
        + n_pad * h * out_sz,
    )

    return pl.pallas_call(
        kernel,
        out_shape=jax.ShapeDtypeStruct((n_pad, h), out_dtype),
        grid_spec=pltpu.PrefetchScalarGridSpec(
            num_scalar_prefetch=0,
            grid=grid,
            in_specs=[
                a_spec,                                            # A+I tile
                xw_spec,                                           # ZW
                pl.BlockSpec((tm, 1), lambda i, kk: (i, 0)),       # row D^-1/2
                pl.BlockSpec((1, tk), lambda i, kk: (0, kk)),      # col D^-1/2
                pl.BlockSpec((1, h), lambda i, kk: (0, 0)),        # bias
                pl.BlockSpec((1, h), lambda i, kk: (0, 0)),        # PReLU alpha
            ],
            out_specs=pl.BlockSpec((tm, h), lambda i, kk: (i, 0)),
            scratch_shapes=[pltpu.VMEM((tm, h), jnp.float32)],
        ),
        compiler_params=pltpu.CompilerParams(
            dimension_semantics=("parallel", "arbitrary"),
            vmem_limit_bytes=budget,
        ),
        cost_estimate=cost,
    )(a_plus_i, xw,
      d_inv_sqrt.reshape(n_pad, 1), d_inv_sqrt.reshape(1, n_pad), b, alpha)


def _fused_fits(n_pad, f, h, budget):
    tm = n_pad // 2 if n_pad >= 256 else n_pad
    bytes_ = (2 * tm * n_pad * 2 + 2 * n_pad * f * 2 + 2 * f * h * 2
              + 2 * tm * h * 4 + n_pad * h * 4 + 2 * _MIB)
    return bytes_ <= min(budget, 24 * _MIB)


def fused_gcn_layer(a_plus_i, z, w, d_inv_sqrt, b, alpha, *,
                    out_dtype=jnp.bfloat16, vmem_budget=None):
    """Single pallas_call GCN layer for small graphs (everything VMEM-resident)."""
    n_pad = a_plus_i.shape[0]
    f = z.shape[1]
    h = w.shape[1]
    budget = _vmem_budget_bytes() if vmem_budget is None else vmem_budget
    if z.dtype != jnp.bfloat16:
        z = z.astype(jnp.bfloat16)
    if w.dtype != jnp.bfloat16:
        w = w.astype(jnp.bfloat16)

    rows = 2 if (n_pad >= 256 and (n_pad // 2) % 8 == 0) else 1   # v7x dual TC
    tm = n_pad // rows

    return pl.pallas_call(
        _fused_layer_kernel,
        out_shape=jax.ShapeDtypeStruct((n_pad, h), out_dtype),
        grid_spec=pltpu.PrefetchScalarGridSpec(
            num_scalar_prefetch=0,
            grid=(rows,),
            in_specs=[
                pl.BlockSpec((tm, n_pad), lambda i: (i, 0)),       # A+I rows
                pl.BlockSpec((n_pad, f), lambda i: (0, 0)),        # z (full)
                pl.BlockSpec((f, h), lambda i: (0, 0)),            # W
                pl.BlockSpec((tm, 1), lambda i: (i, 0)),           # row D^-1/2
                pl.BlockSpec((1, n_pad), lambda i: (0, 0)),        # col D^-1/2
                pl.BlockSpec((1, h), lambda i: (0, 0)),            # bias
                pl.BlockSpec((1, h), lambda i: (0, 0)),            # alpha
            ],
            out_specs=pl.BlockSpec((tm, h), lambda i: (i, 0)),
        ),
        compiler_params=pltpu.CompilerParams(
            dimension_semantics=("parallel",),
            vmem_limit_bytes=budget,
        ),
        cost_estimate=pl.CostEstimate(
            flops=2 * n_pad * f * h * rows + 2 * n_pad * n_pad * h,
            transcendentals=0,
            bytes_accessed=n_pad * n_pad * 2 + n_pad * (f + h) * 2),
    )(a_plus_i, z, w,
      d_inv_sqrt.reshape(n_pad, 1), d_inv_sqrt.reshape(1, n_pad), b, alpha)


# ------------------------------ plain-JAX glue --------------------------------

def precompute_graph(edge_index, edge_weight, num_nodes):
    """Padded dense (A + I) in bf16 plus D^{-1/2} in f32 (hoist for static graphs)."""
    n = num_nodes
    n_pad = _round_up(n, 128)
    src, dst = edge_index
    w = (jnp.ones(src.shape, jnp.float32) if edge_weight is None
         else edge_weight.astype(jnp.float32))
    a = jnp.zeros((n_pad, n_pad), jnp.float32).at[src, dst].add(w)
    idx = jnp.arange(n)
    a = a.at[idx, idx].add(1.0)                        # self loops (real nodes)
    deg = jnp.sum(a, axis=1)
    d_inv_sqrt = jnp.where(deg > 0, jax.lax.rsqrt(deg), 0.0).astype(jnp.float32)
    return a.astype(jnp.bfloat16), d_inv_sqrt, n_pad


def init_params(key, input_dim, hidden_dim, num_layers):
    keys = jax.random.split(key, num_layers)
    layers = []
    for i in range(num_layers):
        fan_in = input_dim if i == 0 else hidden_dim
        bound = 1.0 / jnp.sqrt(jnp.float32(fan_in))
        layers.append({
            "w": jax.random.uniform(keys[i], (fan_in, hidden_dim), jnp.float32,
                                    -bound, bound),
            "b": jnp.zeros((1, hidden_dim), jnp.float32),
        })
    return {
        "layers": layers,
        # shared nn.PReLU(hidden_dim): per-channel slope, default 0.25
        "alpha": jnp.full((1, hidden_dim), 0.25, jnp.float32),
    }


def gconv_forward(params, x, edge_index, edge_weight=None, *, allow_fused=True):
    n, f = x.shape
    # TODO(synk): cache (a_plus_i, d_inv_sqrt) across calls when the graph is static.
    a_plus_i, d_inv_sqrt, n_pad = precompute_graph(edge_index, edge_weight, n)
    budget = _vmem_budget_bytes()

    # Pad node rows with zeros: keeps blocks 128-aligned / stores lane-dense;
    # padded rows have no edges so they never affect real rows.
    z = jnp.zeros((n_pad, f), x.dtype).at[:n, :].set(x) if n_pad != n else x

    layers = params["layers"]
    alpha = params["alpha"]
    for li, layer in enumerate(layers):
        last = li == len(layers) - 1
        out_dtype = jnp.float32 if last else jnp.bfloat16   # bf16 intermediates
        fin = z.shape[1]
        if allow_fused and _fused_fits(n_pad, fin, layer["w"].shape[1], budget):
            z = fused_gcn_layer(a_plus_i, z, layer["w"], d_inv_sqrt,
                                layer["b"], alpha,
                                out_dtype=out_dtype, vmem_budget=budget)
        else:
            zw = matmul_bf16(z, layer["w"], out_dtype=jnp.bfloat16,
                             vmem_budget=budget)
            z = gcn_aggregate_prelu(a_plus_i, zw, d_inv_sqrt, layer["b"], alpha,
                                    out_dtype=out_dtype, vmem_budget=budget)
    return z[:n, :]


def gconv_reference(params, x, edge_index, edge_weight=None):
    """Pure-f32 XLA reference with identical semantics."""
    n = x.shape[0]
    src, dst = edge_index
    w = (jnp.ones(src.shape, jnp.float32) if edge_weight is None
         else edge_weight.astype(jnp.float32))
    a = jnp.zeros((n, n), jnp.float32).at[src, dst].add(w) + jnp.eye(n)
    d = jnp.sum(a, axis=1)
    dis = jnp.where(d > 0, 1.0 / jnp.sqrt(d), 0.0)
    a_hat = a * dis[:, None] * dis[None, :]
    z = x
    for layer in params["layers"]:
        h = a_hat @ (z @ layer["w"]) + layer["b"]
        z = jnp.where(h > 0, h, params["alpha"] * h)
    return z


# ------------------------------ demo -------------------------------------------

if __name__ == "__main__":
    # Small shapes; N deliberately NOT a multiple of 128 to exercise padding.
    N, F, H, L = 300, 96, 128, 2

    key = jax.random.PRNGKey(0)
    k_x, k_p = jax.random.split(key)

    x = jax.random.normal(k_x, (N, F), jnp.float32)

    # deterministic ring graph, both directions
    src = jnp.arange(N, dtype=jnp.int32)
    dst = (src + 1) % N
    edge_index = jnp.stack([jnp.concatenate([src, dst]),
                            jnp.concatenate([dst, src])], axis=0)
    edge_weight = None

    params = init_params(k_p, F, H, L)

    # Fused small-graph path
    z_fused = jax.block_until_ready(
        gconv_forward(params, x, edge_index, edge_weight, allow_fused=True))
    # General tiled path (matmul + resident-XW aggregation kernels)
    z_tiled = jax.block_until_ready(
        gconv_forward(params, x, edge_index, edge_weight, allow_fused=False))

    assert z_fused.shape == (N, H) and z_tiled.shape == (N, H)
    assert bool(jnp.all(jnp.isfinite(z_fused)))
    assert bool(jnp.all(jnp.isfinite(z_tiled)))

    z_ref = gconv_reference(params, x, edge_index, edge_weight)
    diff_fused = float(jnp.max(jnp.abs(z_fused - z_ref)))
    diff_tiled = float(jnp.max(jnp.abs(z_tiled - z_ref)))
    diff_paths = float(jnp.max(jnp.abs(z_fused - z_tiled)))
    assert diff_fused < 0.06, f"fused path vs f32 reference: {diff_fused}"
    assert diff_tiled < 0.06, f"tiled path vs f32 reference: {diff_tiled}"
    assert diff_paths < 0.03, f"fused vs tiled mismatch: {diff_paths}"

    print("KERNEL_OK")
</pallas_src>

<mosaic_0001>
module attributes {stable_mosaic.version = 11 : i64} {
  func.func @_fused_layer_kernel(%arg0: i32, %arg1: memref<192x384xbf16, #tpu.memory_space<vmem>>, %arg2: memref<384x96xbf16, #tpu.memory_space<vmem>>, %arg3: memref<96x128xbf16, #tpu.memory_space<vmem>>, %arg4: memref<192x1xf32, #tpu.memory_space<vmem>>, %arg5: memref<1x384xf32, #tpu.memory_space<vmem>>, %arg6: memref<1x128xf32, #tpu.memory_space<vmem>>, %arg7: memref<1x128xf32, #tpu.memory_space<vmem>>, %arg8: memref<192x128xbf16, #tpu.memory_space<vmem>>) attributes {dimension_semantics = [#tpu.dimension_semantics<parallel>], iteration_bounds = array<i64: 2>, scalar_prefetch = 0 : i64, scratch_operands = 0 : i64, tpu.core_type = #tpu.core_type<tc>, window_params = [{transform_indices = @transform_0, window_bounds = array<i64: 192, 384>}, {pipeline_mode = #tpu.pipeline_mode<synchronous>, transform_indices = @transform_1, window_bounds = array<i64: 384, 96>}, {pipeline_mode = #tpu.pipeline_mode<synchronous>, transform_indices = @transform_2, window_bounds = array<i64: 96, 128>}, {transform_indices = @transform_3, window_bounds = array<i64: 192, 1>}, {pipeline_mode = #tpu.pipeline_mode<synchronous>, transform_indices = @transform_4, window_bounds = array<i64: 1, 384>}, {pipeline_mode = #tpu.pipeline_mode<synchronous>, transform_indices = @transform_5, window_bounds = array<i64: 1, 128>}, {pipeline_mode = #tpu.pipeline_mode<synchronous>, transform_indices = @transform_6, window_bounds = array<i64: 1, 128>}, {transform_indices = @transform_7, window_bounds = array<i64: 192, 128>}]} {
    %c0 = arith.constant 0 : index
    %c0_0 = arith.constant 0 : index
    %0 = vector.load %arg2[%c0, %c0_0] : memref<384x96xbf16, #tpu.memory_space<vmem>>, vector<384x96xbf16>
    %c0_1 = arith.constant 0 : index
    %c0_2 = arith.constant 0 : index
    %1 = vector.load %arg3[%c0_1, %c0_2] : memref<96x128xbf16, #tpu.memory_space<vmem>>, vector<96x128xbf16>
    %cst = arith.constant dense<0.000000e+00> : vector<384x128xf32>
    %2 = tpu.matmul %0, %1, %cst {dimension_numbers = #tpu.dot_dimension_numbers<[1], [0], [0], [1], [0, 0, 1, 1], [], []>} : vector<384x96xbf16>, vector<96x128xbf16>, vector<384x128xf32> -> vector<384x128xf32>
    %3 = arith.truncf %2 : vector<384x128xf32> to vector<384x128xbf16>
    %c0_3 = arith.constant 0 : index
    %c0_4 = arith.constant 0 : index
    %4 = vector.load %arg1[%c0_3, %c0_4] : memref<192x384xbf16, #tpu.memory_space<vmem>>, vector<192x384xbf16>
    %5 = arith.extf %4 : vector<192x384xbf16> to vector<192x384xf32>
    %c0_5 = arith.constant 0 : index
    %c0_6 = arith.constant 0 : index
    %6 = vector.load %arg4[%c0_5, %c0_6] : memref<192x1xf32, #tpu.memory_space<vmem>>, vector<192x1xf32>
    %7 = vector.broadcast %6 : vector<192x1xf32> to vector<192x384xf32>
    %8 = arith.mulf %5, %7 : vector<192x384xf32>
    %c0_7 = arith.constant 0 : index
    %c0_8 = arith.constant 0 : index
    %9 = vector.load %arg5[%c0_7, %c0_8] : memref<1x384xf32, #tpu.memory_space<vmem>>, vector<1x384xf32>
    %10 = vector.broadcast %9 : vector<1x384xf32> to vector<192x384xf32>
    %11 = arith.mulf %8, %10 : vector<192x384xf32>
    %12 = arith.truncf %11 : vector<192x384xf32> to vector<192x384xbf16>
    %cst_9 = arith.constant dense<0.000000e+00> : vector<192x128xf32>
    %13 = tpu.matmul %12, %3, %cst_9 {dimension_numbers = #tpu.dot_dimension_numbers<[1], [0], [0], [1], [0, 0, 1, 1], [], []>} : vector<192x384xbf16>, vector<384x128xbf16>, vector<192x128xf32> -> vector<192x128xf32>
    %c0_10 = arith.constant 0 : index
    %c0_11 = arith.constant 0 : index
    %14 = vector.load %arg6[%c0_10, %c0_11] : memref<1x128xf32, #tpu.memory_space<vmem>>, vector<1x128xf32>
    %15 = vector.broadcast %14 : vector<1x128xf32> to vector<192x128xf32>
    %16 = arith.addf %13, %15 : vector<192x128xf32>
    %cst_12 = arith.constant 0.000000e+00 : f32
    %17 = vector.broadcast %cst_12 : f32 to vector<192x128xf32>
    %18 = arith.cmpf ogt, %16, %17 : vector<192x128xf32>
    %c0_13 = arith.constant 0 : index
    %c0_14 = arith.constant 0 : index
    %19 = vector.load %arg7[%c0_13, %c0_14] : memref<1x128xf32, #tpu.memory_space<vmem>>, vector<1x128xf32>
    %20 = vector.broadcast %19 : vector<1x128xf32> to vector<192x128xf32>
    %21 = arith.mulf %20, %16 : vector<192x128xf32>
    %22 = arith.select %18, %16, %21 : vector<192x128xi1>, vector<192x128xf32>
    %23 = arith.truncf %22 : vector<192x128xf32> to vector<192x128xbf16>
    %c0_15 = arith.constant 0 : index
    %c0_16 = arith.constant 0 : index
    %24 = vector.load %arg8[%c0_15, %c0_16] : memref<192x128xbf16, #tpu.memory_space<vmem>>, vector<192x128xbf16>
    tpu.vector_store %arg8[%c0_15, %c0_16], %23 {strides = array<i32>} : memref<192x128xbf16, #tpu.memory_space<vmem>>, vector<192x128xbf16>,
    return
  }
  func.func @transform_0(%arg0: i32) -> (i32, i32) {
    %c0_i32 = arith.constant 0 : i32
    %c0_i32_0 = arith.constant 0 : i32
    return %arg0, %c0_i32 : i32, i32
  }
  func.func @transform_1(%arg0: i32) -> (i32, i32) {
    %c0_i32 = arith.constant 0 : i32
    %c0_i32_0 = arith.constant 0 : i32
    %c0_i32_1 = arith.constant 0 : i32
    return %c0_i32, %c0_i32_0 : i32, i32
  }
  func.func @transform_2(%arg0: i32) -> (i32, i32) {
    %c0_i32 = arith.constant 0 : i32
    %c0_i32_0 = arith.constant 0 : i32
    %c0_i32_1 = arith.constant 0 : i32
    return %c0_i32, %c0_i32_0 : i32, i32
  }
  func.func @transform_3(%arg0: i32) -> (i32, i32) {
    %c0_i32 = arith.constant 0 : i32
    %c0_i32_0 = arith.constant 0 : i32
    return %arg0, %c0_i32 : i32, i32
  }
  func.func @transform_4(%arg0: i32) -> (i32, i32) {
    %c0_i32 = arith.constant 0 : i32
    %c0_i32_0 = arith.constant 0 : i32
    %c0_i32_1 = arith.constant 0 : i32
    return %c0_i32, %c0_i32_0 : i32, i32
  }
  func.func @transform_5(%arg0: i32) -> (i32, i32) {
    %c0_i32 = arith.constant 0 : i32
    %c0_i32_0 = arith.constant 0 : i32
    %c0_i32_1 = arith.constant 0 : i32
    return %c0_i32, %c0_i32_0 : i32, i32
  }
  func.func @transform_6(%arg0: i32) -> (i32, i32) {
    %c0_i32 = arith.constant 0 : i32
    %c0_i32_0 = arith.constant 0 : i32
    %c0_i32_1 = arith.constant 0 : i32
    return %c0_i32, %c0_i32_0 : i32, i32
  }
  func.func @transform_7(%arg0: i32) -> (i32, i32) {
    %c0_i32 = arith.constant 0 : i32
    %c0_i32_0 = arith.constant 0 : i32
    return %arg0, %c0_i32 : i32, i32
  }
}

</mosaic_0001>

<bundles_post_ra>
// kernel: tpu_custom_call.1
= control target key start
LH: loop header
LB: loop body
LE: loop exit
PB: predicated region body
PF: predicated region fallthrough
CT: control target
= control target key end

     0   :  { %12 = vsyncpa [#allocation3], 0  ;;  %s2963_s0 = inlined_call_operand.vmem [shape: bf16[384,384], index: 0, kind: input, shape index: {}]   ;;  %s2964_s1 = inlined_call_operand.vmem [shape: bf16[384,96], index: 1, kind: input, shape index: {}]   ;;  %s2965_s2 = inlined_call_operand.vmem [shape: bf16[96,128], index: 2, kind: input, shape index: {}]   ;;  %s2966_s3 = inlined_call_operand.vmem [shape: f32[384,1], index: 3, kind: input, shape index: {}]   ;;  %s2967_s4 = inlined_call_operand.vmem [shape: f32[1,384], index: 4, kind: input, shape index: {}]   ;;  %s2968_s5 = inlined_call_operand.vmem [shape: f32[1,128], index: 5, kind: input, shape index: {}]   ;;  %s2969_s6 = inlined_call_operand.vmem [shape: f32[1,128], index: 6, kind: input, shape index: {}]   ;;  %s2970_s7 = inlined_call_operand.hbm [shape: bf16[384,128], index: 7, kind: output, shape index: {}]  }
   0x1   :  { %14 = vsyncpa [#allocation3 + $0x1], 0  ;;  %s2048_s24 = smov 0   ;;  %s2050_s25 = smov 0  }
   0x2   :  { %s2052_s26 = smov 0   ;;  %s2054_s27 = smov 0  }
   0x3 LB: > { %s2069_s28 = sadd.s32 4294967295, %s2003_s27   ;;  %s1625_s29 = sadd.s32 4294967294, %s2003_s27   ;;  %s2003_s27 = sphi %s2054_s27, %s3014_s27   ;;  %s1999_s26 = sphi %s2052_s26, %s3013_s26   ;;  %s1995_s25 = sphi %s2050_s25, %s3012_s25   ;;  %s1991_s24 = sphi %s2048_s24, %s3011_s24  }
   0x4   : > { %s2073_s30 = sadd.s32 1, %s2003_s27   ;;  %s184_s8 = sadd.s32 1, %s1999_s26 }
   0x5   : > { %s181_s9 = ssub.s32 %s2003_s27, %s2073_s30  ;;  %p194_p0 = scmp.ne.s32.totalorder %s1999_s26, %s1995_s25 }
   0x6   : > { %p182_p1 = scmp.eq.s32.totalorder %s181_s9, 0  ;;  %p195_p2 = scmp.eq.s32.totalorder %s2069_s28, 1 }
   0x7   : > { %p200_p3 = scmp.ne.s32.totalorder %s1995_s25, %s1991_s24  ;;  %p201_p4 = scmp.eq.s32.totalorder %s1625_s29, 1 }
   0x8   : > { %s2084_s10 = scalar_select %p182_p1, %s1999_s26, %s184_s8  }
   0x9   : > { %p2086_p5 = por %p195_p2, %p194_p0  ;;  %p2090_p6 = por %p201_p4, %p200_p3 }
   0xa   : > { %p1628_p7 = scmp.ge.s32.totalorder %s2003_s27, 1  ;;  %p253_p8 = scmp.lt.s32.totalorder %s2003_s27, 3 }
   0xc   : > { %p254_p9 = pnand %p1628_p7, %p253_p8 }
   0xe   : > { %257 = sbr.rel (%p254_p9) target bundleno = 779 (0x30b), region = 48 }
  0x13   : > { %v1807_v0 = vld [vmem:[%s2965_s2 + $0x28] sm:$0xff]  ;;  %v1806_v1 = vld [vmem:[%s2965_s2 + $0x20] sm:$0xff]  ;;  %v1805_v2 = vld [vmem:[%s2965_s2 + $0x18] sm:$0xff]  ;;  %vm522_vm0 = vcmask 785408   ;;  %s291_s21 = smul.u32 24, %s2069_s28  ;;  %v2005_v19 = vmov 0  }
  0x14   : > { %597 = vmatpush.bf16.msra.mxu0 %v1807_v0  ;;  %1881 = vmatpush.bf16.msra.mxu2 %v1807_v0  ;;  %v1804_v3 = vld [vmem:[%s2965_s2 + $0x10] sm:$0xff]  ;;  %v1803_v4 = vld [vmem:[%s2965_s2 + $0x8] sm:$0xff]  ;;  %v1802_v5 = vld [vmem:[%s2965_s2] sm:$0xff]  ;;  %s288_s20 = sand.u32 1, %s1995_s25   ;;  %s1961_s19 = scalar_lea.hbm %s2970_s7, 192 }
  0x15   : > { %1880 = vmatpush.bf16.msra.mxu1 %v1807_v0  ;;  %v1778_v6 = vld [vmem:[%s2964_s1] sm:$0xff]  ;;  %v1779_v9 = vld [vmem:[%s2964_s1 + $0x8] sm:$0xff]  ;;  %v1780_v12 = vld [vmem:[%s2964_s1 + $0x10] sm:$0xff]  ;;  %p292_p10 = scmp.lt.s32.totalorder %s291_s21, 47  ;;  %1936 = vset.pattern.permute.xlu0 %v2005_v19 }
  0x16   : > { %v1798_v7 = vld [vmem:[%s2964_s1 + $0xa0] sm:$0xff]  ;;  %v1799_v10 = vld [vmem:[%s2964_s1 + $0xa8] sm:$0xff]  ;;  %v1800_v13 = vld [vmem:[%s2964_s1 + $0xb0] sm:$0xff]  ;;  %1937 = vset.pattern.permute.xlu1 %v2005_v19  ;;  %1938 = vset.pattern.permute.xlu2 %v2005_v19 }
  0x17   : > { %v1794_v8 = vld [vmem:[%s2964_s1 + $0x80] sm:$0xff]  ;;  %v1795_v11 = vld [vmem:[%s2964_s1 + $0x88] sm:$0xff]  ;;  %v1796_v14 = vld [vmem:[%s2964_s1 + $0x90] sm:$0xff]  ;;  %s3016_s21 = smov (!%p292_p10, %s291_s21), 47 }
  0x18   : > { %598 = vmatpush.bf16.msra.mxu0 %v1806_v1  ;;  %1883 = vmatpush.bf16.msra.mxu2 %v1806_v1  ;;  %v1781_v15 = vld [vmem:[%s2964_s1 + $0x18] sm:$0xff]  ;;  %v1782_v18 = vld [vmem:[%s2964_s1 + $0x20] sm:$0xff]  ;;  %s1630_s29 = sshll.u32 %s3016_s21, 3  ;;  %v1783_v21 = vld [vmem:[%s2964_s1 + $0x28] sm:$0xff]  ;;  %s1893_s18 = smul.u32 12, %s3016_s21 }
  0x19   : > { %1882 = vmatpush.bf16.msra.mxu1 %v1806_v1  ;;  %v1801_v16 = vld [vmem:[%s2964_s1 + $0xb8] sm:$0xff]  ;;  %s2173_s13 = scalar_lea.vmem %s2966_s3, %s1630_s29  ;;  %v1784_v24 = vld [vmem:[%s2964_s1 + $0x30] sm:$0xff]  ;;  %v1786_v27 = vld [vmem:[%s2964_s1 + $0x40] sm:$0xff]  ;;  %s1808_s21 = smul.u32 96, %s2069_s28 }
  0x1a   : > { %v1797_v17 = vld [vmem:[%s2964_s1 + $0x98] sm:$0xff]  ;;  %v868_v20 = vld [vmem:[%s2173_s13] sm:$0xff]  ;;  %v869_v22 = vld [vmem:[%s2173_s13 + $0x8] sm:$0xff]  ;;  %s2264_s22 = scalar_lea.vmem %s2963_s0, %s1893_s18  ;;  %s1536_s28 = scalar_lea.sflag [#allocation3], %s288_s20 }
  0x1b   : > { %894 = vperm.xlu0 %1936, %v868_v20   ;;  %v870_v23 = vld [vmem:[%s2173_s13 + $0x10] sm:$0xff]  ;;  %v871_v25 = vld [vmem:[%s2173_s13 + $0x18] sm:$0xff]  ;;  %v872_v29 = vld [vmem:[%s2173_s13 + $0x20] sm:$0xff]  ;;  %s1547_s9 = scalar_lea.hbm %s2970_s7, %s1808_s21 }
  0x1c   : > { %599 = vmatpush.bf16.msra.mxu0 %v1805_v2  ;;  %1885 = vmatpush.bf16.msra.mxu2 %v1805_v2  ;;  %v1785_v26 = vld [vmem:[%s2964_s1 + $0x38] sm:$0xff]  ;;  %v874_v31 = vld [vmem:[%s2173_s13 + $0x30] sm:$0xff]  ;;  %v873_v35 = vld [vmem:[%s2173_s13 + $0x28] sm:$0xff]  ;;  %s1550_s15 = sshll.u32 %s1547_s9, 4  ;;  %s1551_s15 = int_to_ptr.hbm [resolvable:$true] %s1550_s15 }
  0x1d   : > { %1884 = vmatpush.bf16.msra.mxu1 %v1805_v2  ;;  %904 = vperm.xlu1 %1937, %v870_v23   ;;  %v875_v30 = vld [vmem:[%s2173_s13 + $0x38] sm:$0xff]  ;;  %v1787_v39 = vld [vmem:[%s2964_s1 + $0x48] sm:$0xff]  ;;  %v1788_v47 = vld [vmem:[%s2964_s1 + $0x50] sm:$0xff]  ;;  %s1955_s16 = sshra.s32 %s1551_s15, 4  ;;  %s1956_s16 = int_to_ptr.hbm [resolvable:$true] %s1955_s16 }
  0x1e   : > { %914 = vperm.xlu2 %1938, %v872_v29   ;;  %v877_v41 = vld [vmem:[%s2173_s13 + $0x48] sm:$0xff]  ;;  %v878_v49 = vld [vmem:[%s2173_s13 + $0x50] sm:$0xff]  ;;  %v876_v53 = vld [vmem:[%s2173_s13 + $0x40] sm:$0xff]  ;;  %p1962_p0 = scmp.lt.s32.totalorder %s1956_s16, %s2970_s7 }
  0x1f   : > { %v1789_v57 = vld [vmem:[%s2964_s1 + $0x58] sm:$0xff]  ;;  %v881_v59 = vld [vmem:[%s2173_s13 + $0x68] sm:$0xff]  ;;  %v880_v60 = vld [vmem:[%s2173_s13 + $0x60] sm:$0xff] }
  0x20   : > { %600 = vmatpush.bf16.msra.mxu0 %v1804_v3  ;;  %1887 = vmatpush.bf16.msra.mxu2 %v1804_v3  ;;  %v879_v0 = vld [vmem:[%s2173_s13 + $0x58] sm:$0xff] }
  0x21   : > { %1886 = vmatpush.bf16.msra.mxu1 %v1804_v3  ;;  %v1790_v3 = vld [vmem:[%s2964_s1 + $0x60] sm:$0xff] }
  0x23   : > { %899 = vperm.xlu0 %1936, %v869_v22   ;;  %v2277_v22 = vld [vmem:[%s2967_s4] sm:$0x7] }
  0x24   : > { %601 = vmatpush.bf16.msra.mxu0 %v1803_v4  ;;  %1889 = vmatpush.bf16.msra.mxu2 %v1803_v4 }
  0x25   : > { %1888 = vmatpush.bf16.msra.mxu1 %v1803_v4  ;;  %909 = vperm.xlu1 %1937, %v871_v25  }
  0x26   : > { %919 = vperm.xlu2 %1938, %v873_v35  }
  0x28   : > { %602 = vmatpush.bf16.msra.mxu0 %v1802_v5  ;;  %1891 = vmatpush.bf16.msra.mxu2 %v1802_v5 }
  0x29   : > { %1890 = vmatpush.bf16.msra.mxu1 %v1802_v5 }
  0x2b   : > { %1751 = vmatmul.msk.bf16.vlgmr.msra.gmra.mxu0 %vm522_vm0, %v1778_v6  ;;  %1771 = vmatmul.msk.bf16.vlgmr.msra.gmra.mxu2 %vm522_vm0, %v1798_v7  ;;  %v883_v7 = vld [vmem:[%s2173_s13 + $0x78] sm:$0xff] }
  0x2c   : > { %1767 = vmatmul.msk.bf16.vlgmr.msra.gmra.mxu1 %vm522_vm0, %v1794_v8  ;;  %924 = vperm.xlu0 %1936, %v874_v31  }
  0x2d   : > { %929 = vperm.xlu1 %1937, %v875_v30  }
  0x2e   : > { %934 = vperm.xlu2 %1938, %v876_v53   ;;  %v887_v53 = vld [vmem:[%s2173_s13 + $0x98] sm:$0xff] }
  0x34   : > { %939 = vperm.xlu0 %1936, %v877_v41   ;;  %v2299_v41 = vld [vmem:[%s2264_s22] sm:$0xff] }
  0x35   : > { %944 = vperm.xlu1 %1937, %v878_v49  }
  0x36   : > { %949 = vperm.xlu2 %1938, %v879_v0  }
  0x3b   : > { %1752 = vmatmul.msk.bf16.gmra.mxu0 %vm522_vm0, %v1779_v9  ;;  %1772 = vmatmul.msk.bf16.gmra.mxu2 %vm522_vm0, %v1799_v10 }
  0x3c   : > { %1768 = vmatmul.msk.bf16.gmra.mxu1 %vm522_vm0, %v1795_v11  ;;  %954 = vperm.xlu0 %1936, %v880_v60  }
  0x3d   : > { %959 = vperm.xlu1 %1937, %v881_v59  }
  0x44   : > { %969 = vperm.xlu0 %1936, %v883_v7   ;;  %v2330_v7 = vld [vmem:[%s2264_s22 + $0x18] sm:$0xff] }
  0x4b   : > { %1753 = vmatmul.msk.bf16.gmra.mxu0 %vm522_vm0, %v1780_v12  ;;  %1773 = vmatmul.msk.bf16.gmra.mxu2 %vm522_vm0, %v1800_v13 }
  0x4c   : > { %1769 = vmatmul.msk.bf16.gmra.mxu1 %vm522_vm0, %v1796_v14 }
  0x5b   : > { %1754 = vmatmul.msk.bf16.gmra.mxu0 %vm522_vm0, %v1781_v15  ;;  %1774 = vmatmul.msk.bf16.gmra.mxu2 %vm522_vm0, %v1801_v16  ;;  %v749_v15 = vld [vmem:[%s2264_s22 + $0x8] sm:$0xf]  ;;  %v751_v16 = vld [vmem:[%s2264_s22 + $0x14] sm:$0xf] }
  0x5c   : > { %1770 = vmatmul.msk.bf16.gmra.mxu1 %vm522_vm0, %v1797_v17  ;;  %v1791_v17 = vld [vmem:[%s2964_s1 + $0x68] sm:$0xff]  ;;  %v798_v19 = vunpack.c.l.bf16 %v749_v15  ;;  %v801_v20 = vunpack.c.l.bf16 %v751_v16  ;;  %v1793_v15 = vld [vmem:[%s2964_s1 + $0x78] sm:$0xff] }
  0x6b   : > { %1755 = vmatmul.msk.bf16.gmra.mxu0 %vm522_vm0, %v1782_v18 }
  0x78   : > { %v2324_v0 = vpop.permute.xlu2 %914 }
  0x7b   : > { %1756 = vmatmul.msk.bf16.gmra.mxu0 %vm522_vm0, %v1783_v21  ;;  %v884_v21 = vld [vmem:[%s2173_s13 + $0x80] sm:$0xff] }
  0x7c   : > { %974 = vperm.xlu1 %1937, %v884_v21  }
  0x80   : > { %v2342_v21 = vpop.permute.xlu2 %919 }
  0x84   : > { %989 = vperm.xlu1 %1937, %v887_v53   ;;  %v761_v53 = vld [vmem:[%s2264_s22 + $0x50] sm:$0xf] }
  0x8b   : > { %1757 = vmatmul.msk.bf16.gmra.mxu0 %vm522_vm0, %v1784_v24 }
  0x8d   : > { %v2257_v10 = vpop.permute.xlu0 %894 }
  0x8e   : > { %v1014_v25 = vmul.f32 %v2257_v10, %v798_v19 }
  0x8f   : > { %v2289_v30 = vpop.permute.xlu1 %904 }
  0x95   : > { %v2279_v24 = vpop.permute.xlu0 %899 }
  0x9b   : > { %1758 = vmatmul.msk.bf16.gmra.mxu0 %vm522_vm0, %v1785_v26  ;;  %v1017_v26 = vmul.f32 %v2279_v24, %v801_v20  ;;  %v889_v20 = vld [vmem:[%s2173_s13 + $0xa8] sm:$0xff] }
  0xa8   : > { %v2194_v28 = vpop.f32.mrf.mxu0 }
  0xa9   : > { %v2200_v32 = vpop.f32.mrf.mxu1 }
  0xab   : > { %1759 = vmatmul.msk.bf16.gmra.mxu0 %vm522_vm0, %v1786_v27  ;;  %v2285_v27 = vperm.slane %v2277_v22, 2 }
  0xad   : > { %v1097_v35 = vmul.f32 %v2285_v27, %v1017_v26 }
  0xae   : > { %v704_v33 = vpop.f32.mrf.mxu2 }
  0xb0   : > { %v2202_v34 = vpop.f32.mrf.mxu0 }
  0xb1   : > { %v724_v36 = vpack.c.bf16 %v2202_v34, %v2194_v28  ;;  %v2207_v38 = vpop.f32.mrf.mxu1  ;;  %v771_v34 = vld [vmem:[%s2264_s22 + $0x8c] sm:$0xf] }
  0xb6   : > { %v706_v37 = vpop.f32.mrf.mxu2 }
  0xb7   : > { %v744_v12 = vpack.c.bf16 %v706_v37, %v704_v33  ;;  %v1094_v33 = vmul.f32 %v2285_v27, %v1014_v25  ;;  %v882_v37 = vld [vmem:[%s2173_s13 + $0x70] sm:$0xff] }
  0xb8   : > { %v2212_v40 = vpop.f32.mrf.mxu0  ;;  %964 = vperm.xlu2 %1938, %v882_v37  }
  0xb9   : > { %v2218_v44 = vpop.f32.mrf.mxu1 }
  0xbb   : > { %1760 = vmatmul.msk.bf16.gmra.mxu0 %vm522_vm0, %v1787_v39  ;;  %v740_v39 = vpack.c.bf16 %v2207_v38, %v2200_v32 }
  0xbe   : > { %v709_v42 = vpop.f32.mrf.mxu2 }
  0xc0   : > { %v2216_v43 = vpop.f32.mrf.mxu0 }
  0xc1   : > { %v725_v45 = vpack.c.bf16 %v2216_v43, %v2212_v40  ;;  %v2228_v50 = vpop.f32.mrf.mxu1 }
  0xc2   : > { %v741_v29 = vpack.c.bf16 %v2228_v50, %v2218_v44  ;;  %v1166_v44 = vpack.c.bf16 %v1097_v35, %v1094_v33  ;;  %v1792_v50 = vld [vmem:[%s2964_s1 + $0x70] sm:$0xff] }
  0xc6   : > { %v711_v46 = vpop.f32.mrf.mxu2 }
  0xc7   : > { %v745_v9 = vpack.c.bf16 %v711_v46, %v709_v42  ;;  %v797_v42 = vunpack.c.h.bf16 %v2299_v41  ;;  %v753_v46 = vld [vmem:[%s2264_s22 + $0x20] sm:$0xf] }
  0xc8   : > { %v2225_v48 = vpop.f32.mrf.mxu0  ;;  %v804_v32 = vunpack.c.l.bf16 %v753_v46 }
  0xc9   : > { %v694_v55 = vpop.f32.mrf.mxu1  ;;  %v2305_v49 = vmul.f32 %v2257_v10, %v797_v42 }
  0xca   : > { %v1020_v60 = vmul.f32 %v2289_v30, %v804_v32 }
  0xcb   : > { %1761 = vmatmul.msk.bf16.gmra.mxu0 %vm522_vm0, %v1788_v47  ;;  %v755_v47 = vld [vmem:[%s2264_s22 + $0x2c] sm:$0xf] }
  0xcc   : > { %v807_v38 = vunpack.c.l.bf16 %v755_v47 }
  0xce   : > { %v714_v51 = vpop.f32.mrf.mxu2 }
  0xd0   : > { %v2231_v52 = vpop.f32.mrf.mxu0 }
  0xd1   : > { %v726_v54 = vpack.c.bf16 %v2231_v52, %v2225_v48  ;;  %v696_v62 = vpop.f32.mrf.mxu1 }
  0xd2   : > { %v742_v23 = vpack.c.bf16 %v696_v62, %v694_v55  ;;  %v886_v55 = vld [vmem:[%s2173_s13 + $0x90] sm:$0xff] }
  0xd3   : > { %984 = vperm.xlu0 %1936, %v886_v55  }
  0xd6   : > { %v716_v56 = vpop.f32.mrf.mxu2 }
  0xd7   : > { %v746_v8 = vpack.c.bf16 %v716_v56, %v714_v51  ;;  %v2312_v56 = vpop.permute.xlu1 %909 }
  0xd8   : > { %v2239_v58 = vpop.f32.mrf.mxu0 }
  0xd9   : > { %v699_v6 = vpop.f32.mrf.mxu1 }
  0xdb   : > { %1762 = vmatmul.msk.bf16.gmra.mxu0 %vm522_vm0, %v1789_v57  ;;  %v2316_v57 = vld [vmem:[%s2264_s22 + $0xc] sm:$0xff]  ;;  %999 = vperm.xlu0 %1936, %v889_v20  }
  0xdc   : > { %v800_v59 = vunpack.c.h.bf16 %v2316_v57  ;;  %v799_v20 = vunpack.c.l.bf16 %v2316_v57  ;;  %v2410_v57 = vld [vmem:[%s2264_s22 + $0x54] sm:$0xff] }
  0xde   : > { %v719_v61 = vpop.f32.mrf.mxu2  ;;  %v2322_v62 = vmul.f32 %v2279_v24, %v800_v59  ;;  %v2368_v59 = vld [vmem:[%s2264_s22 + $0x3c] sm:$0xff] }
  0xe0   : > { %v2244_v63 = vpop.f32.mrf.mxu0 }
  0xe1   : > { %v727_v1 = vpack.c.bf16 %v2244_v63, %v2239_v58  ;;  %v701_v13 = vpop.f32.mrf.mxu1  ;;  %v2413_v58 = vld [vmem:[%s2264_s22 + $0x48] sm:$0xff] }
  0xe2   : > { %v743_v14 = vpack.c.bf16 %v701_v13, %v699_v6  ;;  %v885_v6 = vld [vmem:[%s2173_s13 + $0x88] sm:$0xff]  ;;  %v759_v13 = vld [vmem:[%s2264_s22 + $0x44] sm:$0xf] }
  0xe3   : > { %979 = vperm.xlu2 %1938, %v885_v6   ;;  %v813_v19 = vunpack.c.l.bf16 %v759_v13  ;;  %v2376_v6 = vpop.permute.xlu0 %924 }
  0xe6   : > { %v721_v2 = vpop.f32.mrf.mxu2 }
  0xe7   : > { %v747_v4 = vpack.c.bf16 %v721_v2, %v719_v61  ;;  %v1023_v61 = vmul.f32 %v2312_v56, %v807_v38  ;;  %v763_v38 = vld [vmem:[%s2264_s22 + $0x5c] sm:$0xf] }
  0xe8   : > { %v2252_v5 = vpop.f32.mrf.mxu0 }
  0xe9   : > { %1342 = vmatpush.bf16.msra.mxu3 %v747_v4  ;;  %v1103_v4 = vmul.f32 %v2285_v27, %v1023_v61  ;;  %v816_v61 = vunpack.c.l.bf16 %v761_v53  ;;  %v2635_v53 = vld [vmem:[%s2264_s22 + $0xfc] sm:$0xff] }
  0xea   : > { %2989 = vst [vmem:[#allocation12_spill] sm:$0xff] %v2635_v53 }
  0xeb   : > { %1763 = vmatmul.msk.bf16.gmra.mxu0 %vm522_vm0, %v1790_v3  ;;  %v1100_v3 = vmul.f32 %v2285_v27, %v1020_v60  ;;  %v819_v60 = vunpack.c.l.bf16 %v763_v38  ;;  %v891_v38 = vld [vmem:[%s2173_s13 + $0xb8] sm:$0xff] }
  0xed   : > { %1343 = vmatpush.bf16.msra.mxu3 %v746_v8  ;;  %v803_v8 = vunpack.c.h.bf16 %v2330_v7 }
  0xf0   : > { %v2259_v11 = vpop.f32.mrf.mxu0 }
  0xf1   : > { %1344 = vmatpush.bf16.msra.mxu3 %v745_v9  ;;  %v1169_v9 = vpack.c.bf16 %v1103_v4, %v1100_v3  ;;  %v890_v3 = vld [vmem:[%s2173_s13 + $0xb0] sm:$0xff] }
  0xf2   : > { %1004 = vperm.xlu1 %1937, %v890_v3  }
  0xf5   : > { %1345 = vmatpush.bf16.msra.mxu3 %v744_v12  ;;  %v757_v12 = vld [vmem:[%s2264_s22 + $0x38] sm:$0xf] }
  0xf8   : > { %v2271_v18 = vpop.f32.mrf.mxu0 }
  0xf9   : > { %1346 = vmatpush.bf16.msra.mxu3 %v743_v14  ;;  %v2336_v14 = vmul.f32 %v2289_v30, %v803_v8 }
  0xfb   : > { %1764 = vmatmul.msk.bf16.gmra.mxu0 %vm522_vm0, %v1791_v17  ;;  %v810_v17 = vunpack.c.l.bf16 %v757_v12  ;;  %v1032_v12 = vmul.f32 %v2376_v6, %v816_v61 }
  0xfd   : > { %1347 = vmatpush.bf16.msra.mxu3 %v742_v23  ;;  %v2346_v23 = vld [vmem:[%s2264_s22 + $0x24] sm:$0xff]  ;;  %v1026_v26 = vmul.f32 %v2324_v0, %v810_v17  ;;  %v1112_v13 = vmul.f32 %v2285_v27, %v1032_v12  ;;  %v2456_v12 = vld [vmem:[%s2264_s22 + $0x6c] sm:$0xff] }
  0xfe   : > { %v806_v25 = vunpack.c.h.bf16 %v2346_v23  ;;  %v805_v61 = vunpack.c.l.bf16 %v2346_v23  ;;  %v824_v23 = vunpack.c.h.bf16 %v2456_v12  ;;  %v2622_v17 = vld [vmem:[%s2264_s22 + $0xe4] sm:$0xff] }
  0xff   : > { %v1106_v37 = vmul.f32 %v2285_v27, %v1026_v26  ;;  %v2400_v26 = vperm.slane %v2277_v22, 0  ;;  %2986 = vst [vmem:[#allocation9_spill] sm:$0xff] %v2622_v17 }
 0x100   : > { %v2291_v31 = vpop.f32.mrf.mxu0  ;;  %v2352_v33 = vmul.f32 %v2312_v56, %v806_v25  ;;  %v767_v25 = vld [vmem:[%s2264_s22 + $0x74] sm:$0xf] }
 0x101   : > { %1348 = vmatpush.bf16.msra.mxu3 %v741_v29  ;;  %v1029_v29 = vmul.f32 %v2342_v21, %v813_v19  ;;  %v729_v4 = vpack.c.bf16 %v2291_v31, %v2271_v18  ;;  %v728_v18 = vpack.c.bf16 %v2259_v11, %v2252_v5  ;;  %v796_v19 = vunpack.c.l.bf16 %v2299_v41  ;;  %v765_v11 = vld [vmem:[%s2264_s22 + $0x68] sm:$0xf] }
 0x102   : > { %v822_v63 = vunpack.c.l.bf16 %v765_v11 }
 0x105   : > { %1349 = vmatpush.bf16.msra.mxu3 %v740_v39  ;;  %v1109_v39 = vmul.f32 %v2285_v27, %v1029_v29  ;;  %v1012_v29 = vmul.f32 %v2257_v10, %v796_v19  ;;  %v815_v10 = vunpack.c.h.bf16 %v2413_v58 }
 0x107   : > { %v1172_v47 = vpack.c.bf16 %v1109_v39, %v1106_v37  ;;  %v818_v37 = vunpack.c.h.bf16 %v2410_v57  ;;  %v2417_v39 = vpop.permute.xlu2 %934  ;;  %v1092_v48 = vmul.f32 %v2400_v26, %v1012_v29 }
 0x108   : > { %v634_v51 = vpop.f32.mrf.mxu0  ;;  %1350 = vmatmul.bf16.vlgmr.msra.gmra.mxu3 %v1166_v44  ;;  %v2357_v44 = vld [vmem:[%s2264_s22 + $0x30] sm:$0xff] }
 0x109   : > { %v809_v46 = vunpack.c.h.bf16 %v2357_v44 }
 0x10b   : > { %1765 = vmatmul.msk.bf16.gmra.mxu0 %vm522_vm0, %v1792_v50  ;;  %v2361_v32 = vmul.f32 %v2324_v0, %v809_v46  ;;  %v1038_v46 = vmul.f32 %v2417_v39, %v822_v63 }
 0x10d   : > { %v1118_v43 = vmul.f32 %v2285_v27, %v1038_v46  ;;  %v773_v46 = vld [vmem:[%s2264_s22 + $0x98] sm:$0xf] }
 0x110   : > { %v636_v2 = vpop.f32.mrf.mxu0 }
 0x111   : > { %v730_v50 = vpack.c.bf16 %v636_v2, %v634_v51  ;;  %v812_v51 = vunpack.c.h.bf16 %v2368_v59  ;;  %v2374_v2 = vpop.permute.xlu1 %929 }
 0x113   : > { %v2379_v8 = vmul.f32 %v2342_v21, %v812_v51 }
 0x118   : > { %v639_v16 = vpop.f32.mrf.mxu0  ;;  %1355 = vmatmul.bf16.gmra.mxu3 %v1169_v9  ;;  %v1035_v9 = vmul.f32 %v2374_v2, %v819_v60  ;;  %v802_v60 = vunpack.c.l.bf16 %v2330_v7 }
 0x11a   : > { %v1018_v3 = vmul.f32 %v2289_v30, %v802_v60 }
 0x11b   : > { %1766 = vmatmul.msk.bf16.gmra.mxu0 %vm522_vm0, %v1793_v15  ;;  %v1115_v15 = vmul.f32 %v2285_v27, %v1035_v9  ;;  %v2453_v9 = vld [vmem:[%s2264_s22 + $0x60] sm:$0xff] }
 0x11c   : > { %v821_v7 = vunpack.c.h.bf16 %v2453_v9  ;;  %v1098_v30 = vmul.f32 %v2400_v26, %v1018_v3 }
 0x11d   : > { %v1175_v5 = vpack.c.bf16 %v1115_v15, %v1112_v13  ;;  %v2460_v15 = vpop.permute.xlu2 %949 }
 0x11e   : > { %v2467_v19 = vmul.f32 %v2417_v39, %v821_v7 }
 0x120   : > { %v641_v35 = vpop.f32.mrf.mxu0 }
 0x121   : > { %v731_v42 = vpack.c.bf16 %v641_v35, %v639_v16  ;;  %v888_v16 = vld [vmem:[%s2173_s13 + $0xa0] sm:$0xff]  ;;  %v1015_v35 = vmul.f32 %v2279_v24, %v799_v20  ;;  %v2419_v24 = vpop.permute.xlu0 %939  ;;  %s1957_s13 = scalar_lea.hbm %s1956_s16, 96 }
 0x122   : > { %994 = vperm.xlu2 %1938, %v888_v16   ;;  %v2462_v16 = vpop.permute.xlu1 %944  ;;  %v2470_v20 = vmul.f32 %v2419_v24, %v824_v23  ;;  %p1958_p11 = scmp.ne.s32.totalorder %s1956_s16, %s1957_s13  ;;  %p1963_p1 = scmp.lt.s32.totalorder %s1961_s19, %s1957_s13 }
 0x123   : > { %1204 = vmatpush.bf16.msrb.mxu1 %v731_v42  ;;  %v1095_v52 = vmul.f32 %v2400_v26, %v1015_v35  ;;  %v2430_v42 = vmul.f32 %v2376_v6, %v815_v10  ;;  %v811_v10 = vunpack.c.l.bf16 %v2368_v59 }
 0x124   : > { %p1959_p12 = pnand %p1958_p11, %p2086_p5  ;;  %p1964_p2 = por %p1963_p1, %p1962_p0 }
 0x126   : > { %p1960_p13 = pneg %p1959_p12 }
 0x127   : > { %1205 = vmatpush.bf16.msrb.mxu1 %v730_v50  ;;  %v1164_v50 = vpack.c.bf16 %v1095_v52, %v1092_v48  ;;  %v775_v52 = vld [vmem:[%s2264_s22 + $0xa4] sm:$0xf] }
 0x128   : > { %v2365_v55 = vpop.f32.mrf.mxu0  ;;  %1360 = vmatmul.bf16.gmra.mxu3 %v1172_v47  ;;  %v837_v60 = vunpack.c.l.bf16 %v775_v52  ;;  %v2525_v52 = vld [vmem:[%s2264_s22 + $0x9c] sm:$0xff]  ;;  %p1965_p3 = pnand %p1964_p2, %p1960_p13 }
 0x129   : > { %2982 = vst [vmem:[#allocation5_spill] sm:$0xff] %v2365_v55 }
 0x12a   : > { %1009 = vperm.xlu2 %1938, %v891_v38   ;;  %v2492_v38 = vld [vmem:[%s2264_s22 + $0x78] sm:$0xff] }
 0x12b   : > { %1206 = vmatpush.bf16.msrb.mxu1 %v729_v4  ;;  %v1021_v4 = vmul.f32 %v2312_v56, %v805_v61  ;;  %v834_v61 = vunpack.c.l.bf16 %v773_v46  ;;  %v827_v59 = vunpack.c.h.bf16 %v2492_v38  ;;  %v2528_v46 = vld [vmem:[%s2264_s22 + $0x90] sm:$0xff] }
 0x12d   : > { %v1101_v56 = vmul.f32 %v2400_v26, %v1021_v4  ;;  %v2506_v3 = vmul.f32 %v2462_v16, %v827_v59 }
 0x12f   : > { %1207 = vmatpush.bf16.msrb.mxu1 %v728_v18  ;;  %v831_v18 = vunpack.c.l.bf16 %v771_v34  ;;  %v2498_v34 = vpop.permute.xlu0 %954 }
 0x130   : > { %v2385_v31 = vpop.f32.mrf.mxu0 }
 0x131   : > { %2983 = vst [vmem:[#allocation6_spill] sm:$0xff] %v2385_v31 }
 0x133   : > { %1208 = vmatpush.bf16.msrb.mxu1 %v727_v1  ;;  %v825_v1 = vunpack.c.l.bf16 %v767_v25  ;;  %v1167_v25 = vpack.c.bf16 %v1101_v56, %v1098_v30  ;;  %v860_v56 = vunpack.c.h.bf16 %v2635_v53 }
 0x135   : > { %v1041_v47 = vmul.f32 %v2419_v24, %v825_v1 }
 0x137   : > { %1209 = vmatpush.bf16.msrb.mxu1 %v726_v54  ;;  %v2427_v54 = vmul.f32 %v2374_v2, %v818_v37  ;;  %v808_v37 = vunpack.c.l.bf16 %v2357_v44 }
 0x138   : > { %v2407_v41 = vpop.f32.mrf.mxu0  ;;  %1365 = vmatmul.bf16.gmra.mxu3 %v1175_v5  ;;  %v1047_v5 = vmul.f32 %v2460_v15, %v831_v18  ;;  %v1050_v18 = vmul.f32 %v2498_v34, %v834_v61  ;;  %v2534_v61 = vpop.permute.xlu0 %969 }
 0x139   : > { %2984 = vst [vmem:[#allocation7_spill] sm:$0xff] %v2407_v41 }
 0x13a   : > { %v1127_v63 = vmul.f32 %v2285_v27, %v1047_v5  ;;  %v1130_v23 = vmul.f32 %v2285_v27, %v1050_v18  ;;  %v817_v5 = vunpack.c.l.bf16 %v2410_v57  ;;  %v836_v57 = vunpack.c.h.bf16 %v2525_v52 }
 0x13b   : > { %1210 = vmatpush.bf16.msrb.mxu1 %v725_v45  ;;  %v1121_v45 = vmul.f32 %v2285_v27, %v1041_v47  ;;  %v1024_v47 = vmul.f32 %v2324_v0, %v808_v37 }
 0x13c   : > { %v1033_v37 = vmul.f32 %v2374_v2, %v817_v5  ;;  %v823_v5 = vunpack.c.l.bf16 %v2456_v12 }
 0x13d   : > { %v1178_v28 = vpack.c.bf16 %v1121_v45, %v1118_v43  ;;  %v2489_v45 = vld [vmem:[%s2264_s22 + $0x84] sm:$0xff]  ;;  %v1104_v0 = vmul.f32 %v2400_v26, %v1024_v47 }
 0x13e   : > { %v830_v44 = vunpack.c.h.bf16 %v2489_v45 }
 0x13f   : > { %1211 = vmatpush.bf16.msrb.mxu1 %v724_v36  ;;  %v769_v36 = vld [vmem:[%s2264_s22 + $0x80] sm:$0xf] }
 0x140   : > { %v2437_v40 = vpop.f32.mrf.mxu0  ;;  %v828_v13 = vunpack.c.l.bf16 %v769_v36  ;;  %v2503_v36 = vmul.f32 %v2460_v15, %v830_v44 }
 0x141   : > { %2985 = vst [vmem:[#allocation8_spill] sm:$0xff] %v2437_v40 }
 0x142   : > { %1212 = vmatmul.bf16.vlgmr.msrb.gmra.mxu1 %v1164_v50  ;;  %v1044_v11 = vmul.f32 %v2462_v16, %v828_v13  ;;  %v1027_v50 = vmul.f32 %v2342_v21, %v811_v10 }
 0x144   : > { %v1124_v35 = vmul.f32 %v2285_v27, %v1044_v11  ;;  %v1107_v21 = vmul.f32 %v2400_v26, %v1027_v50  ;;  %v814_v11 = vunpack.c.l.bf16 %v2413_v58  ;;  %v833_v58 = vunpack.c.h.bf16 %v2528_v46 }
 0x146   : > { %v1181_v48 = vpack.c.bf16 %v1127_v63, %v1124_v35  ;;  %v1170_v13 = vpack.c.bf16 %v1107_v21, %v1104_v0  ;;  %v777_v35 = vld [vmem:[%s2264_s22 + $0xb0] sm:$0xf]  ;;  %v779_v63 = vld [vmem:[%s2264_s22 + $0xbc] sm:$0xf]  ;;  %v1030_v10 = vmul.f32 %v2376_v6, %v814_v11  ;;  %v1113_v6 = vmul.f32 %v2400_v26, %v1033_v37 }
 0x147   : > { %v840_v47 = vunpack.c.l.bf16 %v777_v35  ;;  %v843_v50 = vunpack.c.l.bf16 %v779_v63  ;;  %v2542_v59 = vmul.f32 %v2498_v34, %v833_v58  ;;  %v781_v35 = vld [vmem:[%s2264_s22 + $0xc8] sm:$0xf]  ;;  %v1039_v37 = vmul.f32 %v2419_v24, %v823_v5 }
 0x148   : > { %v2450_v51 = vpop.f32.mrf.mxu0  ;;  %1370 = vmatmul.bf16.gmra.mxu3 %v1178_v28  ;;  %v2496_v28 = vpop.permute.xlu1 %959  ;;  %v1110_v2 = vmul.f32 %v2400_v26, %v1030_v10  ;;  %v846_v58 = vunpack.c.l.bf16 %v781_v35  ;;  %v826_v35 = vunpack.c.l.bf16 %v2492_v38 }
 0x149   : > { %v1053_v4 = vmul.f32 %v2496_v28, %v837_v60  ;;  %v2532_v60 = vpop.permute.xlu2 %964  ;;  %v2539_v44 = vmul.f32 %v2496_v28, %v836_v57  ;;  %v1059_v21 = vmul.f32 %v2534_v61, %v843_v50  ;;  %v2562_v50 = vld [vmem:[%s2264_s22 + $0xb4] sm:$0xff]  ;;  %v1119_v24 = vmul.f32 %v2400_v26, %v1039_v37  ;;  %v787_v37 = vld [vmem:[%s2264_s22 + $0xec] sm:$0xf] }
 0x14a   : > { %v1056_v0 = vmul.f32 %v2532_v60, %v840_v47  ;;  %v2559_v47 = vld [vmem:[%s2264_s22 + $0xa8] sm:$0xff]  ;;  %v842_v12 = vunpack.c.h.bf16 %v2562_v50 }
 0x14b   : > { %v1133_v30 = vmul.f32 %v2285_v27, %v1053_v4  ;;  %v1173_v4 = vpack.c.bf16 %v1113_v6, %v1110_v2 }
 0x150   : > { %v2474_v29 = vpop.f32.mrf.mxu0  ;;  %v2568_v6 = vpop.permute.xlu1 %974 }
 0x151   : > { %v2566_v2 = vpop.permute.xlu2 %979 }
 0x152   : > { %1217 = vmatmul.bf16.gmra.mxu1 %v1167_v25  ;;  %v1184_v25 = vpack.c.bf16 %v1133_v30, %v1130_v23  ;;  %v1139_v23 = vmul.f32 %v2285_v27, %v1059_v21  ;;  %v820_v30 = vunpack.c.l.bf16 %v2453_v9  ;;  %v839_v9 = vunpack.c.h.bf16 %v2559_v47 }
 0x153   : > { %v2576_v21 = vmul.f32 %v2534_v61, %v842_v12 }
 0x154   : > { %v1036_v63 = vmul.f32 %v2417_v39, %v820_v30 }
 0x156   : > { %v1116_v39 = vmul.f32 %v2400_v26, %v1036_v63 }
 0x158   : > { %v2486_v43 = vpop.f32.mrf.mxu0  ;;  %1375 = vmatmul.bf16.gmra.mxu3 %v1181_v48 }
 0x160   : > { %v2510_v7 = vpop.f32.mrf.mxu0 }
 0x162   : > { %1222 = vmatmul.bf16.gmra.mxu1 %v1170_v13  ;;  %v1136_v13 = vmul.f32 %v2285_v27, %v1056_v0  ;;  %v2573_v0 = vmul.f32 %v2532_v60, %v839_v9  ;;  %v785_v9 = vld [vmem:[%s2264_s22 + $0xe0] sm:$0xf] }
 0x164   : > { %v1187_v11 = vpack.c.bf16 %v1139_v23, %v1136_v13  ;;  %v1062_v13 = vmul.f32 %v2568_v6, %v846_v58  ;;  %v1176_v23 = vpack.c.bf16 %v1119_v24, %v1116_v39  ;;  %v1042_v58 = vmul.f32 %v2462_v16, %v826_v35 }
 0x165   : > { %v855_v39 = vunpack.c.l.bf16 %v787_v37  ;;  %v852_v24 = vunpack.c.l.bf16 %v785_v9  ;;  %v2615_v9 = vperm.slane %v2277_v22, 1  ;;  %v854_v22 = vunpack.c.h.bf16 %v2622_v17 }
 0x166   : > { %v1142_v5 = vmul.f32 %v2285_v27, %v1062_v13  ;;  %v1122_v38 = vmul.f32 %v2400_v26, %v1042_v58 }
 0x168   : > { %v2522_v48 = vpop.f32.mrf.mxu0  ;;  %1380 = vmatmul.bf16.gmra.mxu3 %v1184_v25  ;;  %v783_v25 = vld [vmem:[%s2264_s22 + $0xd4] sm:$0xf] }
 0x169   : > { %v849_v57 = vunpack.c.l.bf16 %v783_v25  ;;  %v829_v25 = vunpack.c.l.bf16 %v2489_v45  ;;  %v2594_v45 = vpop.permute.xlu0 %984 }
 0x170   : > { %v2546_v18 = vpop.f32.mrf.mxu0 }
 0x171   : > { %v2652_v55 = vpop.permute.xlu0 %999 }
 0x172   : > { %1227 = vmatmul.bf16.gmra.mxu1 %v1173_v4  ;;  %v1065_v4 = vmul.f32 %v2566_v2, %v849_v57  ;;  %v1045_v57 = vmul.f32 %v2460_v15, %v829_v25  ;;  %v2602_v15 = vld [vmem:[%s2264_s22 + $0xc0] sm:$0xff]  ;;  %v1068_v25 = vmul.f32 %v2594_v45, %v852_v24  ;;  %v2625_v24 = vld [vmem:[%s2264_s22 + $0xd8] sm:$0xff] }
 0x173   : > { %2987 = vst [vmem:[#allocation10_spill] sm:$0xff] %v2625_v24 }
 0x174   : > { %v1125_v13 = vmul.f32 %v2400_v26, %v1045_v57  ;;  %v1148_v58 = vmul.f32 %v2285_v27, %v1068_v25  ;;  %v789_v25 = vld [vmem:[%s2264_s22 + $0xf8] sm:$0xf] }
 0x176   : > { %v1179_v35 = vpack.c.bf16 %v1125_v13, %v1122_v38  ;;  %v2628_v38 = vld [vmem:[%s2264_s22 + $0xf0] sm:$0xff]  ;;  %v835_v13 = vunpack.c.l.bf16 %v2525_v52  ;;  %v2646_v52 = vmul.f32 %v2615_v9, %v2322_v62  ;;  %v858_v62 = vunpack.c.l.bf16 %v789_v25 }
 0x177   : > { %2988 = vst [vmem:[#allocation11_spill] sm:$0xff] %v2628_v38  ;;  %v857_v1 = vunpack.c.h.bf16 %v2628_v38  ;;  %v1076_v38 = vmul.f32 %v2652_v55, %v860_v56  ;;  %v2679_v56 = vmul.f32 %v2615_v9, %v2427_v54  ;;  %v2725_v54 = vld [vmem:[%s2264_s22 + $0x114] sm:$0xff]  ;;  %v793_v25 = vld [vmem:[%s2264_s22 + $0x110] sm:$0xf] }
 0x178   : > { %v2556_v10 = vpop.f32.mrf.mxu0  ;;  %1385 = vmatmul.bf16.gmra.mxu3 %v1187_v11  ;;  %v1145_v11 = vmul.f32 %v2285_v27, %v1065_v4  ;;  %v2592_v4 = vpop.permute.xlu1 %989  ;;  %v1051_v53 = vmul.f32 %v2496_v28, %v835_v13  ;;  %v2687_v13 = vmul.f32 %v2615_v9, %v2470_v20  ;;  %v2705_v20 = vmul.f32 %v2615_v9, %v2573_v0 }
 0x179   : > { %v2671_v28 = vmul.f32 %v2615_v9, %v1076_v38  ;;  %v866_v0 = vunpack.c.h.bf16 %v2725_v54 }
 0x17a   : > { %v1190_v63 = vpack.c.bf16 %v1145_v11, %v1142_v5  ;;  %v845_v5 = vunpack.c.h.bf16 %v2602_v15  ;;  %v1071_v11 = vmul.f32 %v2592_v4, %v855_v39 }
 0x17c   : > { %v2612_v37 = vmul.f32 %v2568_v6, %v845_v5  ;;  %v1151_v39 = vmul.f32 %v2285_v27, %v1071_v11  ;;  %v851_v5 = vunpack.c.h.bf16 %v2625_v24  ;;  %v2639_v11 = vmul.f32 %v2615_v9, %v2305_v49  ;;  %v2650_v17 = vpop.permute.xlu2 %994  ;;  %v791_v49 = vld [vmem:[%s2264_s22 + $0x104] sm:$0xf] }
 0x17d   : > { %v1073_v31 = vmul.f32 %v2650_v17, %v857_v1 }
 0x17e   : > { %v1193_v24 = vpack.c.bf16 %v1151_v39, %v1148_v58  ;;  %v861_v39 = vunpack.c.l.bf16 %v791_v49 }
 0x17f   : > { %v2666_v58 = vmul.f32 %v2615_v9, %v1073_v31  ;;  %v2683_v31 = vmul.f32 %v2615_v9, %v2467_v19 }
 0x180   : > { %v2580_v30 = vpop.f32.mrf.mxu0 }
 0x181   : > { %2990 = vst [vmem:[#allocation13_spill] sm:$0xff] %v2666_v58  ;;  %v1099_v58 = vmul.f32 %v2615_v9, %v2336_v14 }
 0x182   : > { %1232 = vmatmul.bf16.gmra.mxu1 %v1176_v23  ;;  %v2599_v23 = vld [vmem:[%s2264_s22 + $0xcc] sm:$0xff] }
 0x183   : > { %v848_v16 = vunpack.c.h.bf16 %v2599_v23 }
 0x188   : > { %v2590_v12 = vpop.f32.mrf.mxu0  ;;  %1390 = vmatmul.bf16.gmra.mxu3 %v1190_v63  ;;  %v2609_v63 = vmul.f32 %v2566_v2, %v848_v16  ;;  %v832_v16 = vunpack.c.l.bf16 %v2528_v46  ;;  %v1070_v46 = vmul.f32 %v2592_v4, %v854_v22 }
 0x18a   : > { %v1048_v41 = vmul.f32 %v2498_v34, %v832_v16  ;;  %v2660_v40 = vmul.f32 %v2615_v9, %v1070_v46  ;;  %v2675_v34 = vmul.f32 %v2615_v9, %v2430_v42  ;;  %v1131_v42 = vmul.f32 %v2400_v26, %v1051_v53 }
 0x18b   : > { %v2699_v16 = vmul.f32 %v2615_v9, %v2539_v44  ;;  %v1077_v44 = vmul.f32 %v2652_v55, %v861_v39  ;;  %v838_v53 = vunpack.c.l.bf16 %v2559_v47  ;;  %v2728_v39 = vld [vmem:[%s2264_s22 + $0x108] sm:$0xff]  ;;  %v841_v46 = vunpack.c.l.bf16 %v2562_v50  ;;  %v2737_v47 = vpop.permute.xlu2 %1009 }
 0x18c   : > { %v1128_v38 = vmul.f32 %v2400_v26, %v1048_v41  ;;  %v2709_v41 = vmul.f32 %v2615_v9, %v2576_v21  ;;  %v1082_v50 = vmul.f32 %v2737_v47, %v866_v0 }
 0x18d   : > { %v1157_v19 = vmul.f32 %v2285_v27, %v1077_v44  ;;  %v1057_v1 = vmul.f32 %v2534_v61, %v841_v46  ;;  %v2769_v61 = vmul.f32 %v2615_v9, %v2503_v36 }
 0x18f   : > { %v1137_v36 = vmul.f32 %v2400_v26, %v1057_v1  ;;  %v2991_v1 = vpack.c.bf16 %v2510_v7, %v2486_v43 }
 0x190   : > { %v2617_v57 = vpop.f32.mrf.mxu0 }
 0x192   : > { %1237 = vmatmul.bf16.gmra.mxu1 %v1179_v35  ;;  %v1067_v35 = vmul.f32 %v2594_v45, %v851_v5 }
 0x194   : > { %v2663_v22 = vmul.f32 %v2615_v9, %v1067_v35  ;;  %v1182_v35 = vpack.c.bf16 %v1131_v42, %v1128_v38  ;;  %v863_v38 = vunpack.c.h.bf16 %v2728_v39  ;;  %v2735_v42 = vmul.f32 %v2615_v9, %v2609_v63  ;;  %v795_v63 = vld [vmem:[%s2264_s22 + $0x11c] sm:$0xf]  ;;  %s1892_s22 = smul.u32 96, %s288_s20 }
 0x195   : > { %v867_v14 = vunpack.c.l.bf16 %v795_v63  ;;  %v2993_v63 = vld [vmem:[#allocation8_spill] sm:$0xff] }
 0x196   : > { %s2866_s23 = scalar_lea.vmem [#allocation2], %s1892_s22 }
 0x197   : > { %s1548_s14 = sshll.u32 %s2866_s23, 4  ;;  %s1549_s14 = int_to_ptr.vmem [resolvable:$true] %s1548_s14 }
 0x198   : > { %v679_v5 = vpop.f32.mrf.mxu0  ;;  %1395 = vmatmul.bf16.gmra.mxu3 %v1193_v24  ;;  %v2691_v24 = vmul.f32 %v2615_v9, %v2542_v59  ;;  %v1074_v59 = vmul.f32 %v2650_v17, %v858_v62 }
 0x19a   : > { %v1154_v21 = vmul.f32 %v2285_v27, %v1074_v59  ;;  %v2743_v59 = vmul.f32 %v2615_v9, %v2612_v37  ;;  %v1102_v37 = vmul.f32 %v2615_v9, %v2352_v33 }
 0x19c   : > { %v1196_v44 = vpack.c.bf16 %v1157_v19, %v1154_v21  ;;  %v2758_v19 = vmul.f32 %v2615_v9, %v1082_v50  ;;  %v1189_v33 = vpack.c.bf16 %v2735_v42, %v2743_v59  ;;  %v847_v50 = vunpack.c.l.bf16 %v2599_v23 }
 0x19d   : > { %v2992_v23 = vpack.c.bf16 %v2474_v29, %v2450_v51  ;;  %v3000_v51 = vld [vmem:[#allocation9_spill] sm:$0xff] }
 0x19e   : > { %v853_v29 = vunpack.c.l.bf16 %v3000_v51 }
 0x1a0   : > { %v681_v49 = vpop.f32.mrf.mxu0 }
 0x1a1   : > { %v739_v62 = vpack.c.bf16 %v681_v49, %v679_v5  ;;  %v2739_v5 = vpop.permute.xlu1 %1004  ;;  %v738_v49 = vpack.c.bf16 %v2617_v57, %v2590_v12  ;;  %v1168_v12 = vpack.c.bf16 %v1102_v37, %v1099_v58  ;;  %v864_v57 = vunpack.c.l.bf16 %v793_v25 }
 0x1a2   : > { %1242 = vmatmul.bf16.gmra.mxu1 %v1182_v35  ;;  %v1079_v35 = vmul.f32 %v2739_v5, %v863_v38  ;;  %v1083_v58 = vmul.f32 %v2737_v47, %v867_v14  ;;  %v736_v38 = vpack.c.bf16 %v2546_v18, %v2522_v48  ;;  %v1105_v18 = vmul.f32 %v2615_v9, %v2361_v32  ;;  %v2997_v32 = vld [vmem:[#allocation5_spill] sm:$0xff] }
 0x1a3   : > { %1273 = vmatpush.bf16.msrb.mxu2 %v739_v62  ;;  %v1054_v62 = vmul.f32 %v2532_v60, %v838_v53  ;;  %v2765_v60 = vmul.f32 %v2615_v9, %v2506_v3  ;;  %v737_v53 = vpack.c.bf16 %v2580_v30, %v2556_v10  ;;  %v1080_v25 = vmul.f32 %v2739_v5, %v864_v57 }
 0x1a4   : > { %v2761_v0 = vmul.f32 %v2615_v9, %v1079_v35  ;;  %v1163_v30 = vmul.f32 %v2285_v27, %v1083_v58  ;;  %v844_v35 = vunpack.c.l.bf16 %v2602_v15  ;;  %v1069_v57 = vmul.f32 %v2592_v4, %v853_v29 }
 0x1a5   : > { %v1180_v46 = vpack.c.bf16 %v2769_v61, %v2765_v60  ;;  %v1134_v21 = vmul.f32 %v2400_v26, %v1054_v62  ;;  %v1160_v10 = vmul.f32 %v2285_v27, %v1080_v25  ;;  %v1063_v62 = vmul.f32 %v2566_v2, %v847_v50  ;;  %v2994_v2 = vld [vmem:[#allocation7_spill] sm:$0xff]  ;;  %v2996_v60 = vld [vmem:[#allocation6_spill] sm:$0xff] }
 0x1a6   : > { %v1198_v3 = vpack.c.bf16 %v2758_v19, %v2761_v0  ;;  %v1060_v48 = vmul.f32 %v2568_v6, %v844_v35  ;;  %v1108_v27 = vmul.f32 %v2615_v9, %v2379_v8  ;;  %v2995_v37 = vpack.c.bf16 %v2993_v63, %v2994_v2  ;;  %v3001_v9 = vld [vmem:[#allocation10_spill] sm:$0xff]  ;;  %v3002_v25 = vld [vmem:[#allocation11_spill] sm:$0xff]  ;;  %v2855_v63 = vld [vmem:[%s2969_s6] ss:$0 sm:$0xff] }
 0x1a7   : > { %1274 = vmatpush.bf16.msrb.mxu2 %v738_v49  ;;  %v1199_v49 = vpack.c.bf16 %v1163_v30, %v1160_v10  ;;  %v1143_v43 = vmul.f32 %v2400_v26, %v1063_v62  ;;  %v2998_v61 = vpack.c.bf16 %v2996_v60, %v2997_v32  ;;  %v2999_v8 = vpack.c.bf16 %v2646_v52, %v2639_v11 }
 0x1a8   : > { %1400 = vmatmul.bf16.gmra.mxu3 %v1196_v44  ;;  %v1185_v44 = vpack.c.bf16 %v1137_v36, %v1134_v21  ;;  %v1171_v15 = vpack.c.bf16 %v1108_v27, %v1105_v18  ;;  %v1140_v7 = vmul.f32 %v2400_v26, %v1060_v48  ;;  %v850_v14 = vunpack.c.l.bf16 %v3001_v9 }
 0x1a9   : > { %v1149_v21 = vmul.f32 %v2400_v26, %v1069_v57  ;;  %v865_v50 = vunpack.c.l.bf16 %v2725_v54  ;;  %v862_v35 = vunpack.c.l.bf16 %v2728_v39  ;;  %v3004_v62 = vpack.c.bf16 %v2679_v56, %v2675_v34  ;;  %v1351_v39 = vpop.f32.mrf.mxu3 }
 0x1aa   : > { %v1188_v6 = vpack.c.bf16 %v1143_v43, %v1140_v7  ;;  %v3005_v48 = vpack.c.bf16 %v2687_v13, %v2683_v31  ;;  %v3007_v34 = vpack.c.bf16 %v2709_v41, %v2705_v20  ;;  %v3008_v60 = vpack.c.bf16 %v2660_v40, %v2663_v22 }
 0x1ab   : > { %1275 = vmatpush.bf16.msrb.mxu2 %v737_v53  ;;  %v1066_v53 = vmul.f32 %v2594_v45, %v850_v14 }
 0x1ad   : > { %v1146_v36 = vmul.f32 %v2400_v26, %v1066_v53 }
 0x1af   : > { %1276 = vmatpush.bf16.msrb.mxu2 %v736_v38  ;;  %v1191_v58 = vpack.c.bf16 %v1149_v21, %v1146_v36  ;;  %v856_v38 = vunpack.c.l.bf16 %v3002_v25 }
 0x1b1   : > { %v1072_v52 = vmul.f32 %v2650_v17, %v856_v38  ;;  %v1353_v18 = vpop.f32.mrf.mxu3 }
 0x1b2   : > { %1247 = vmatmul.bf16.gmra.mxu1 %v1185_v44  ;;  %v3003_v44 = vld [vmem:[#allocation12_spill] sm:$0xff] }
 0x1b3   : > { %1277 = vmatpush.bf16.msrb.mxu2 %v2991_v1  ;;  %v859_v11 = vunpack.c.l.bf16 %v3003_v44  ;;  %v1152_v30 = vmul.f32 %v2400_v26, %v1072_v52  ;;  %v1078_v1 = vmul.f32 %v2739_v5, %v862_v35  ;;  %v3006_v5 = vpack.c.bf16 %v2699_v16, %v2691_v24  ;;  %v3009_v44 = vld [vmem:[#allocation13_spill] sm:$0xff] }
 0x1b5   : > { %v1075_v10 = vmul.f32 %v2652_v55, %v859_v11  ;;  %v1158_v17 = vmul.f32 %v2400_v26, %v1078_v1  ;;  %v3010_v11 = vpack.c.bf16 %v2671_v28, %v3009_v44 }
 0x1b7   : > { %1278 = vmatpush.bf16.msrb.mxu2 %v2992_v23  ;;  %v1155_v4 = vmul.f32 %v2400_v26, %v1075_v10 }
 0x1b8   : > { %1405 = vmatmul.bf16.gmra.mxu3 %v1199_v49 }
 0x1b9   : > { %v1194_v45 = vpack.c.bf16 %v1155_v4, %v1152_v30  ;;  %v1356_v27 = vpop.f32.mrf.mxu3 }
 0x1bb   : > { %1279 = vmatpush.bf16.msrb.mxu2 %v2995_v37 }
 0x1bf   : > { %1280 = vmatpush.bf16.msrb.mxu2 %v2998_v61  ;;  %v1213_v54 = vpop.f32.mrf.mxu1 }
 0x1c1   : > { %v1358_v56 = vpop.f32.mrf.mxu3 }
 0x1c2   : > { %1252 = vmatmul.bf16.gmra.mxu1 %v1188_v6  ;;  %1281 = vmatmul.bf16.vlgmr.msrb.gmra.mxu2 %v2999_v8 }
 0x1c9   : > { %v1361_v13 = vpop.f32.mrf.mxu3 }
 0x1d1   : > { %v1363_v20 = vpop.f32.mrf.mxu3 }
 0x1d2   : > { %1257 = vmatmul.bf16.gmra.mxu1 %v1191_v58  ;;  %1286 = vmatmul.bf16.gmra.mxu2 %v1168_v12  ;;  %v1081_v12 = vmul.f32 %v2737_v47, %v865_v50  ;;  %v1215_v47 = vpop.f32.mrf.mxu1 }
 0x1d4   : > { %v1161_v49 = vmul.f32 %v2400_v26, %v1081_v12 }
 0x1d6   : > { %v1197_v55 = vpack.c.bf16 %v1161_v49, %v1158_v17 }
 0x1d9   : > { %v1366_v8 = vpop.f32.mrf.mxu3 }
 0x1da   : > { %v1218_v26 = vpop.f32.mrf.mxu1 }
 0x1e1   : > { %v1368_v22 = vpop.f32.mrf.mxu3 }
 0x1e2   : > { %1262 = vmatmul.bf16.gmra.mxu1 %v1194_v45  ;;  %1291 = vmatmul.bf16.gmra.mxu2 %v1171_v15  ;;  %v1220_v23 = vpop.f32.mrf.mxu1 }
 0x1e9   : > { %v1371_v12 = vpop.f32.mrf.mxu3 }
 0x1ea   : > { %v1223_v31 = vpop.f32.mrf.mxu1 }
 0x1f2   : > { %1267 = vmatmul.bf16.gmra.mxu1 %v1197_v55  ;;  %1296 = vmatmul.bf16.gmra.mxu2 %v3004_v62  ;;  %v1225_v24 = vpop.f32.mrf.mxu1 }
 0x1fa   : > { %v1228_v6 = vpop.f32.mrf.mxu1 }
 0x202   : > { %1301 = vmatmul.bf16.gmra.mxu2 %v3005_v48  ;;  %v1230_v57 = vpop.f32.mrf.mxu1 }
 0x20a   : > { %v1233_v52 = vpop.f32.mrf.mxu1 }
 0x212   : > { %1306 = vmatmul.bf16.gmra.mxu2 %v1180_v46  ;;  %v2845_v46 = vld [vmem:[%s2968_s5] ss:$0 sm:$0xff]  ;;  %v1235_v17 = vpop.f32.mrf.mxu1 }
 0x213   : > { %v1214_v15 = vadd.f32 %v2845_v46, %v1213_v54  ;;  %v1216_v41 = vadd.f32 %v2845_v46, %v1215_v47  ;;  %v1219_v9 = vadd.f32 %v2845_v46, %v1218_v26  ;;  %v1221_v53 = vadd.f32 %v2845_v46, %v1220_v23 }
 0x214   : > { %v1224_v50 = vadd.f32 %v2845_v46, %v1223_v31  ;;  %v1226_v1 = vadd.f32 %v2845_v46, %v1225_v24 }
 0x21a   : > { %v1238_v23 = vpop.f32.mrf.mxu1 }
 0x222   : > { %1311 = vmatmul.bf16.gmra.mxu2 %v3006_v5 }
 0x232   : > { %1316 = vmatmul.bf16.gmra.mxu2 %v3007_v34 }
 0x242   : > { %1321 = vmatmul.bf16.gmra.mxu2 %v1189_v33 }
 0x245   : > { %v1282_v16 = vpop.f32.mrf.mxu2 }
 0x246   : > { %v1283_v43 = vadd.f32 %v1282_v16, %v1214_v15 }
 0x248   : > { %v1352_v7 = vadd.f32 %v1351_v39, %v1283_v43  ;;  %v1373_v39 = vpop.f32.mrf.mxu3 }
 0x24a   : > { %v1439_v42 = vmul.f32 %v2855_v63, %v1352_v7  ;;  %vm1411_vm1 = vcmp.gt.f32.partialorder %v1352_v7, 0.0 }
 0x24c   : > { %v1463_v32 = vsel %vm1411_vm1, %v1352_v7, %v1439_v42 }
 0x24d   : > { %v1284_v2 = vpop.f32.mrf.mxu2 }
 0x24e   : > { %v1285_v37 = vadd.f32 %v1284_v2, %v1216_v41  ;;  %v1234_v2 = vadd.f32 %v2845_v46, %v1233_v52 }
 0x250   : > { %v1354_v59 = vadd.f32 %v1353_v18, %v1285_v37 }
 0x252   : > { %vm1412_vm2 = vcmp.gt.f32.partialorder %v1354_v59, 0.0  ;;  %v1440_v33 = vmul.f32 %v2855_v63, %v1354_v59  ;;  %1326 = vmatmul.bf16.gmra.mxu2 %v3008_v60 }
 0x254   : > { %v1464_v61 = vsel %vm1412_vm2, %v1354_v59, %v1440_v33  ;;  %v1236_v59 = vadd.f32 %v2845_v46, %v1235_v17 }
 0x255   : > { %v1812_v51 = vpack.c.bf16 %v1464_v61, %v1463_v32  ;;  %v1287_v29 = vpop.f32.mrf.mxu2 }
 0x256   : > { %v1288_v14 = vadd.f32 %v1287_v29, %v1219_v9 }
 0x257   : > { %1813 = vst [vmem:[%s2866_s23] sm:$0xff] %v1812_v51  }
 0x258   : > { %v1357_v21 = vadd.f32 %v1356_v27, %v1288_v14  ;;  %v1229_v27 = vadd.f32 %v2845_v46, %v1228_v6 }
 0x25a   : > { %v1441_v58 = vmul.f32 %v2855_v63, %v1357_v21  ;;  %vm1413_vm3 = vcmp.gt.f32.partialorder %v1357_v21, 0.0 }
 0x25c   : > { %v1465_v10 = vsel %vm1413_vm3, %v1357_v21, %v1441_v58 }
 0x25d   : > { %v1289_v36 = vpop.f32.mrf.mxu2 }
 0x25e   : > { %v1290_v40 = vadd.f32 %v1289_v36, %v1221_v53  ;;  %v1239_v36 = vadd.f32 %v2845_v46, %v1238_v23 }
 0x260   : > { %v1359_v25 = vadd.f32 %v1358_v56, %v1290_v40  ;;  %v1231_v56 = vadd.f32 %v2845_v46, %v1230_v57 }
 0x262   : > { %vm1414_vm4 = vcmp.gt.f32.partialorder %v1359_v25, 0.0  ;;  %v1442_v38 = vmul.f32 %v2855_v63, %v1359_v25  ;;  %1331 = vmatmul.bf16.gmra.mxu2 %v3010_v11 }
 0x264   : > { %v1466_v30 = vsel %vm1414_vm4, %v1359_v25, %v1442_v38 }
 0x265   : > { %v1817_v4 = vpack.c.bf16 %v1466_v30, %v1465_v10  ;;  %v1292_v45 = vpop.f32.mrf.mxu2 }
 0x266   : > { %v1293_v35 = vadd.f32 %v1292_v45, %v1224_v50 }
 0x267   : > { %1869 = vst [vmem:[%s2866_s23 + $0x8] sm:$0xff] %v1817_v4  }
 0x268   : > { %v1362_v49 = vadd.f32 %v1361_v13, %v1293_v35  ;;  %v1376_v13 = vpop.f32.mrf.mxu3 }
 0x26a   : > { %v1443_v28 = vmul.f32 %v2855_v63, %v1362_v49  ;;  %vm1415_vm5 = vcmp.gt.f32.partialorder %v1362_v49, 0.0 }
 0x26c   : > { %v1467_v47 = vsel %vm1415_vm5, %v1362_v49, %v1443_v28 }
 0x26d   : > { %v1294_v55 = vpop.f32.mrf.mxu2 }
 0x26e   : > { %v1295_v62 = vadd.f32 %v1294_v55, %v1226_v1 }
 0x270   : > { %v1364_v48 = vadd.f32 %v1363_v20, %v1295_v62  ;;  %v1378_v37 = vpop.f32.mrf.mxu3 }
 0x272   : > { %vm1416_vm6 = vcmp.gt.f32.partialorder %v1364_v48, 0.0  ;;  %v1444_v54 = vmul.f32 %v2855_v63, %v1364_v48  ;;  %1336 = vmatmul.bf16.gmra.mxu2 %v1198_v3  ;;  %v1240_v3 = vpop.f32.mrf.mxu1 }
 0x273   : > { %v1241_v58 = vadd.f32 %v2845_v46, %v1240_v3 }
 0x274   : > { %v1468_v5 = vsel %vm1416_vm6, %v1364_v48, %v1444_v54 }
 0x275   : > { %v1822_v18 = vpack.c.bf16 %v1468_v5, %v1467_v47  ;;  %v1297_v26 = vpop.f32.mrf.mxu2 }
 0x276   : > { %v1298_v34 = vadd.f32 %v1297_v26, %v1229_v27 }
 0x277   : > { %1870 = vst [vmem:[%s2866_s23 + $0x10] sm:$0xff] %v1822_v18  }
 0x278   : > { %v1367_v31 = vadd.f32 %v1366_v8, %v1298_v34  ;;  %v1381_v51 = vpop.f32.mrf.mxu3 }
 0x27a   : > { %v1445_v19 = vmul.f32 %v2855_v63, %v1367_v31  ;;  %vm1417_vm7 = vcmp.gt.f32.partialorder %v1367_v31, 0.0  ;;  %v1243_v42 = vpop.f32.mrf.mxu1 }
 0x27b   : > { %v1244_v1 = vadd.f32 %v2845_v46, %v1243_v42 }
 0x27c   : > { %v1469_v43 = vsel %vm1417_vm7, %v1367_v31, %v1445_v19 }
 0x27d   : > { %v1299_v24 = vpop.f32.mrf.mxu2 }
 0x27e   : > { %v1300_v16 = vadd.f32 %v1299_v24, %v1231_v56 }
 0x280   : > { %v1369_v0 = vadd.f32 %v1368_v22, %v1300_v16  ;;  %v1383_v22 = vpop.f32.mrf.mxu3 }
 0x282   : > { %vm1418_vm8 = vcmp.gt.f32.partialorder %v1369_v0, 0.0  ;;  %v1446_v15 = vmul.f32 %v2855_v63, %v1369_v0  ;;  %v1245_v57 = vpop.f32.mrf.mxu1 }
 0x283   : > { %v1246_v55 = vadd.f32 %v2845_v46, %v1245_v57 }
 0x284   : > { %v1470_v20 = vsel %vm1418_vm8, %v1369_v0, %v1446_v15 }
 0x285   : > { %v1827_v41 = vpack.c.bf16 %v1470_v20, %v1469_v43  ;;  %v1302_v7 = vpop.f32.mrf.mxu2 }
 0x286   : > { %v1303_v6 = vadd.f32 %v1302_v7, %v1234_v2 }
 0x287   : > { %1871 = vst [vmem:[%s2866_s23 + $0x18] sm:$0xff] %v1827_v41  }
 0x288   : > { %v1372_v33 = vadd.f32 %v1371_v12, %v1303_v6  ;;  %v1386_v50 = vpop.f32.mrf.mxu3 }
 0x28a   : > { %v1447_v61 = vmul.f32 %v2855_v63, %v1372_v33  ;;  %vm1419_vm9 = vcmp.gt.f32.partialorder %v1372_v33, 0.0  ;;  %v1248_v11 = vpop.f32.mrf.mxu1 }
 0x28b   : > { %v1249_v56 = vadd.f32 %v2845_v46, %v1248_v11 }
 0x28c   : > { %v1471_v9 = vsel %vm1419_vm9, %v1372_v33, %v1447_v61 }
 0x28d   : > { %v1304_v60 = vpop.f32.mrf.mxu2 }
 0x28e   : > { %v1305_v32 = vadd.f32 %v1304_v60, %v1236_v59 }
 0x290   : > { %v1374_v8 = vadd.f32 %v1373_v39, %v1305_v32  ;;  %v1388_v54 = vpop.f32.mrf.mxu3 }
 0x292   : > { %vm1420_vm10 = vcmp.gt.f32.partialorder %v1374_v8, 0.0  ;;  %v1448_v29 = vmul.f32 %v2855_v63, %v1374_v8  ;;  %v1250_v17 = vpop.f32.mrf.mxu1 }
 0x293   : > { %v1251_v24 = vadd.f32 %v2845_v46, %v1250_v17 }
 0x294   : > { %v1472_v14 = vsel %vm1420_vm10, %v1374_v8, %v1448_v29 }
 0x295   : > { %v1832_v53 = vpack.c.bf16 %v1472_v14, %v1471_v9  ;;  %v1307_v21 = vpop.f32.mrf.mxu2 }
 0x296   : > { %v1308_v40 = vadd.f32 %v1307_v21, %v1239_v36 }
 0x297   : > { %1872 = vst [vmem:[%s2866_s23 + $0x20] sm:$0xff] %v1832_v53  }
 0x298   : > { %v1377_v25 = vadd.f32 %v1376_v13, %v1308_v40  ;;  %v1391_v13 = vpop.f32.mrf.mxu3 }
 0x29a   : > { %v1449_v52 = vmul.f32 %v2855_v63, %v1377_v25  ;;  %vm1421_vm11 = vcmp.gt.f32.partialorder %v1377_v25, 0.0  ;;  %v1253_v18 = vpop.f32.mrf.mxu1 }
 0x29b   : > { %v1254_v42 = vadd.f32 %v2845_v46, %v1253_v18 }
 0x29c   : > { %v1473_v4 = vsel %vm1421_vm11, %v1377_v25, %v1449_v52 }
 0x29d   : > { %v1309_v38 = vpop.f32.mrf.mxu2 }
 0x29e   : > { %v1310_v44 = vadd.f32 %v1309_v38, %v1241_v58 }
 0x2a0   : > { %v1379_v10 = vadd.f32 %v1378_v37, %v1310_v44  ;;  %v1393_v41 = vpop.f32.mrf.mxu3 }
 0x2a2   : > { %vm1422_vm12 = vcmp.gt.f32.partialorder %v1379_v10, 0.0  ;;  %v1450_v30 = vmul.f32 %v2855_v63, %v1379_v10  ;;  %v1255_v19 = vpop.f32.mrf.mxu1 }
 0x2a3   : > { %v1256_v60 = vadd.f32 %v2845_v46, %v1255_v19 }
 0x2a4   : > { %v1474_v45 = vsel %vm1422_vm12, %v1379_v10, %v1450_v30 }
 0x2a5   : > { %v1837_v35 = vpack.c.bf16 %v1474_v45, %v1473_v4  ;;  %v1312_v12 = vpop.f32.mrf.mxu2 }
 0x2a6   : > { %v1313_v49 = vadd.f32 %v1312_v12, %v1244_v1 }
 0x2a7   : > { %1873 = vst [vmem:[%s2866_s23 + $0x28] sm:$0xff] %v1837_v35  }
 0x2a8   : > { %v1382_v62 = vadd.f32 %v1381_v51, %v1313_v49  ;;  %v1396_v61 = vpop.f32.mrf.mxu3 }
 0x2aa   : > { %v1451_v39 = vmul.f32 %v2855_v63, %v1382_v62  ;;  %vm1423_vm13 = vcmp.gt.f32.partialorder %v1382_v62, 0.0  ;;  %v1258_v59 = vpop.f32.mrf.mxu1 }
 0x2ac   : > { %v1475_v26 = vsel %vm1423_vm13, %v1382_v62, %v1451_v39 }
 0x2ad   : > { %v1314_v28 = vpop.f32.mrf.mxu2 }
 0x2ae   : > { %v1315_v48 = vadd.f32 %v1314_v28, %v1246_v55 }
 0x2b0   : > { %v1384_v47 = vadd.f32 %v1383_v22, %v1315_v48  ;;  %v1259_v22 = vadd.f32 %v2845_v46, %v1258_v59  ;;  %v1398_v58 = vpop.f32.mrf.mxu3 }
 0x2b2   : > { %vm1424_vm14 = vcmp.gt.f32.partialorder %v1384_v47, 0.0  ;;  %v1452_v5 = vmul.f32 %v2855_v63, %v1384_v47  ;;  %v1260_v14 = vpop.f32.mrf.mxu1 }
 0x2b3   : > { %v1261_v44 = vadd.f32 %v2845_v46, %v1260_v14 }
 0x2b4   : > { %v1476_v27 = vsel %vm1424_vm14, %v1384_v47, %v1452_v5 }
 0x2b5   : > { %v1842_v23 = vpack.c.bf16 %v1476_v27, %v1475_v26  ;;  %v1317_v34 = vpop.f32.mrf.mxu2 }
 0x2b6   : > { %v1318_v31 = vadd.f32 %v1317_v34, %v1249_v56 }
 0x2b7   : > { %1874 = vst [vmem:[%s2866_s23 + $0x30] sm:$0xff] %v1842_v23  }
 0x2b8   : > { %v1387_v16 = vadd.f32 %v1386_v50, %v1318_v31  ;;  %v1401_v45 = vpop.f32.mrf.mxu3 }
 0x2ba   : > { %v1453_v15 = vmul.f32 %v2855_v63, %v1387_v16  ;;  %vm1425_vm15 = vcmp.gt.f32.partialorder %v1387_v16, 0.0  ;;  %v1263_v38 = vpop.f32.mrf.mxu1 }
 0x2bb   : > { %v1264_v55 = vadd.f32 %v2845_v46, %v1263_v38 }
 0x2bc   : > { %v1477_v7 = vsel %vm1425_vm15, %v1387_v16, %v1453_v15 }
 0x2bd   : > { %v1319_v0 = vpop.f32.mrf.mxu2 }
 0x2be   : > { %v1320_v3 = vadd.f32 %v1319_v0, %v1251_v24 }
 0x2c0   : > { %v1389_v43 = vadd.f32 %v1388_v54, %v1320_v3  ;;  %v1403_v28 = vpop.f32.mrf.mxu3 }
 0x2c2   : > { %vm1426_vm0 = vcmp.gt.f32.partialorder %v1389_v43, 0.0  ;;  %v1454_v20 = vmul.f32 %v2855_v63, %v1389_v43  ;;  %v1265_v1 = vpop.f32.mrf.mxu1 }
 0x2c3   : > { %v1266_v48 = vadd.f32 %v2845_v46, %v1265_v1 }
 0x2c4   : > { %v1478_v2 = vsel %vm1426_vm0, %v1389_v43, %v1454_v20 }
 0x2c5   : > { %v1847_v37 = vpack.c.bf16 %v1478_v2, %v1477_v7  ;;  %v1322_v6 = vpop.f32.mrf.mxu2 }
 0x2c6   : > { %v1323_v33 = vadd.f32 %v1322_v6, %v1254_v42 }
 0x2c7   : > { %1875 = vst [vmem:[%s2866_s23 + $0x38] sm:$0xff] %v1847_v37  }
 0x2c8   : > { %v1392_v32 = vadd.f32 %v1391_v13, %v1323_v33  ;;  %v1406_v56 = vpop.f32.mrf.mxu3 }
 0x2ca   : > { %v1455_v29 = vmul.f32 %v2855_v63, %v1392_v32  ;;  %vm1427_vm1 = vcmp.gt.f32.partialorder %v1392_v32, 0.0  ;;  %v1268_v5 = vpop.f32.mrf.mxu1 }
 0x2cb   : > { %v1269_v24 = vadd.f32 %v2845_v46, %v1268_v5 }
 0x2cc   : > { %v1479_v53 = vsel %vm1427_vm1, %v1392_v32, %v1455_v29 }
 0x2cd   : > { %v1324_v8 = vpop.f32.mrf.mxu2 }
 0x2ce   : > { %v1325_v51 = vadd.f32 %v1324_v8, %v1256_v60 }
 0x2d0   : > { %v1394_v9 = vadd.f32 %v1393_v41, %v1325_v51  ;;  %v1408_v20 = vpop.f32.mrf.mxu3 }
 0x2d2   : > { %vm1428_vm2 = vcmp.gt.f32.partialorder %v1394_v9, 0.0  ;;  %v1456_v57 = vmul.f32 %v2855_v63, %v1394_v9  ;;  %v1270_v19 = vpop.f32.mrf.mxu1 }
 0x2d3   : > { %v1271_v0 = vadd.f32 %v2845_v46, %v1270_v19 }
 0x2d4   : > { %v1480_v21 = vsel %vm1428_vm2, %v1394_v9, %v1456_v57 }
 0x2d5   : > { %v1852_v36 = vpack.c.bf16 %v1480_v21, %v1479_v53  ;;  %v1327_v40 = vpop.f32.mrf.mxu2 }
 0x2d6   : > { %v1328_v25 = vadd.f32 %v1327_v40, %v1259_v22 }
 0x2d7   : > { %1876 = vst [vmem:[%s2866_s23 + $0x40] sm:$0xff] %v1852_v36  }
 0x2d8   : > { %v1397_v11 = vadd.f32 %v1396_v61, %v1328_v25 }
 0x2da   : > { %v1457_v30 = vmul.f32 %v2855_v63, %v1397_v11  ;;  %vm1429_vm3 = vcmp.gt.f32.partialorder %v1397_v11, 0.0 }
 0x2dc   : > { %v1481_v35 = vsel %vm1429_vm3, %v1397_v11, %v1457_v30 }
 0x2dd   : > { %v1329_v52 = vpop.f32.mrf.mxu2 }
 0x2de   : > { %v1330_v10 = vadd.f32 %v1329_v52, %v1261_v44 }
 0x2e0   : > { %v1399_v4 = vadd.f32 %v1398_v58, %v1330_v10 }
 0x2e2   : > { %vm1430_vm4 = vcmp.gt.f32.partialorder %v1399_v4, 0.0  ;;  %v1458_v50 = vmul.f32 %v2855_v63, %v1399_v4 }
 0x2e4   : > { %v1482_v12 = vsel %vm1430_vm4, %v1399_v4, %v1458_v50 }
 0x2e5   : > { %v1857_v49 = vpack.c.bf16 %v1482_v12, %v1481_v35  ;;  %v1332_v17 = vpop.f32.mrf.mxu2 }
 0x2e6   : > { %v1333_v62 = vadd.f32 %v1332_v17, %v1264_v55 }
 0x2e7   : > { %1877 = vst [vmem:[%s2866_s23 + $0x48] sm:$0xff] %v1857_v49  }
 0x2e8   : > { %v1402_v54 = vadd.f32 %v1401_v45, %v1333_v62 }
 0x2ea   : > { %v1459_v18 = vmul.f32 %v2855_v63, %v1402_v54  ;;  %vm1431_vm5 = vcmp.gt.f32.partialorder %v1402_v54, 0.0 }
 0x2ec   : > { %v1483_v23 = vsel %vm1431_vm5, %v1402_v54, %v1459_v18 }
 0x2ed   : > { %v1334_v39 = vpop.f32.mrf.mxu2 }
 0x2ee   : > { %v1335_v47 = vadd.f32 %v1334_v39, %v1266_v48 }
 0x2f0   : > { %v1404_v26 = vadd.f32 %v1403_v28, %v1335_v47 }
 0x2f2   : > { %vm1432_vm6 = vcmp.gt.f32.partialorder %v1404_v26, 0.0  ;;  %v1460_v27 = vmul.f32 %v2855_v63, %v1404_v26 }
 0x2f4   : > { %v1484_v34 = vsel %vm1432_vm6, %v1404_v26, %v1460_v27 }
 0x2f5   : > { %v1862_v31 = vpack.c.bf16 %v1484_v34, %v1483_v23  ;;  %v1337_v13 = vpop.f32.mrf.mxu2 }
 0x2f6   : > { %v1338_v16 = vadd.f32 %v1337_v13, %v1269_v24 }
 0x2f7   : > { %1878 = vst [vmem:[%s2866_s23 + $0x50] sm:$0xff] %v1862_v31  }
 0x2f8   : > { %v1407_v3 = vadd.f32 %v1406_v56, %v1338_v16 }
 0x2fa   : > { %v1461_v41 = vmul.f32 %v2855_v63, %v1407_v3  ;;  %vm1433_vm7 = vcmp.gt.f32.partialorder %v1407_v3, 0.0 }
 0x2fc   : > { %v1485_v2 = vsel %vm1433_vm7, %v1407_v3, %v1461_v41 }
 0x2fd   : > { %v1339_v15 = vpop.f32.mrf.mxu2 }
 0x2fe   : > { %v1340_v43 = vadd.f32 %v1339_v15, %v1271_v0 }
 0x300   : > { %v1409_v7 = vadd.f32 %v1408_v20, %v1340_v43 }
 0x302   : > { %vm1434_vm8 = vcmp.gt.f32.partialorder %v1409_v7, 0.0  ;;  %v1462_v46 = vmul.f32 %v2855_v63, %v1409_v7 }
 0x304   : > { %v1486_v37 = vsel %vm1434_vm8, %v1409_v7, %v1462_v46 }
 0x305   : > { %v1867_v6 = vpack.c.bf16 %v1486_v37, %v1485_v2 }
 0x307   : > { %1879 = vst [vmem:[%s2866_s23 + $0x58] sm:$0xff] %v1867_v6  }
 0x308   : > { %1968 = shalt.err (!%p1965_p3)
}
 0x309   : > { %s2006_s20 = smov 64   ;;  %s2007_s23 = smov 4  }
 0x30a   : > { %1894 = dma.vmem_to_hbm [thread:$0]  (%p2086_p5), %s1549_s14, 1536, %s1551_s15, %s1536_s28, %s2006_s20, %s2006_s20, %s2007_s23  }
 0x30b PF: > { %p1900_p4 = scmp.ge.s32.totalorder %s2003_s27, 2  ;;  %s1565_s29 = sand.u32 1, %s1991_s24  }
 0x30c   : > { %s1566_s8 = scalar_lea.sflag [#allocation3], %s1565_s29 }
 0x30d   : > { %p1897_p7 = pnand %p1900_p4, %p2090_p6 }
 0x30f   : > { %p1898_p8 = pneg %p1897_p7 }
 0x311   : > { %1986 = dma.done.wait (%p1898_p8), %s1566_s8, 1536  }
 0x312   : > { %1988 = vsyncadd (%p1898_p8), %s1566_s8, 4294965760  ;;  %p17_p9 = scmp.ge.s32.totalorder %s2073_s30, 4   ;;  %s3011_s24 = smov %s1995_s25 }
 0x313   : > { %s3012_s25 = smov %s1999_s26  ;;  %s3013_s26 = smov %s2084_s10 }
 0x314   : > { %s3014_s27 = smov %s2073_s30  ;;  %19 = sbr.rel (!%p17_p9) target bundleno = 3 (0x3), region = 86 }
 0x319   :  { %1572 = vsyncpa [#allocation3], 1 }
 0x31a   :  { %1574 = vsyncpa [#allocation3 + $0x1], 1 }

</bundles_post_ra>
